<compile_context>
chip_gen: v7x
topology: tpu7x:2x2x1
jax: 0.10.0
libtpu: 0.0.40
codegen_flags: <defaults>
</compile_context>

<pallas_src>
import math
import functools

import jax
import jax.numpy as jnp
from jax.experimental import pallas as pl
from jax.experimental.pallas import tpu as pltpu

DROPOUT_P = 0.8
DROPOUT_SCALE = 1.0 / (1.0 - DROPOUT_P)
# Signed-int32 threshold: for bits uniform over int32, P(bits >= THRESH) = 1 - p.
DROPOUT_THRESHOLD = int(round(DROPOUT_P * 2.0**32)) - 2**31  # = 1288490189


def dropout_bits_for(seed, bh, s):
    """Uniform int32 bits, one per attention-weight element."""
    bits = jax.random.bits(jax.random.PRNGKey(seed), (bh, s, s), dtype=jnp.uint32)
    return jax.lax.bitcast_convert_type(bits, jnp.int32)


def _attn_kernel(q_ref, k_ref, v_ref, mask_ref, bits_ref, o_ref, *, scale):
    # q_ref: (tq, D)   k_ref / v_ref: (S, D)
    # mask_ref / bits_ref: (tq, S)   o_ref: (tq, D)

    # bf16 MXU operands, 1/sqrt(D) folded into the small q tile.
    q = (q_ref[...] * scale).astype(jnp.bfloat16)
    k = k_ref[...].astype(jnp.bfloat16)
    v = v_ref[...].astype(jnp.bfloat16)

    # q @ k^T without materializing a transpose: contract D of q with D of k.
    s = jax.lax.dot_general(
        q, k,
        dimension_numbers=(((1,), (1,)), ((), ())),
        preferred_element_type=jnp.float32,
    )
    s = s + mask_ref[...]

    # Numerically stable softmax numerator; normalization deferred to epilogue.
    s = s - jnp.max(s, axis=-1, keepdims=True)
    e = jnp.exp(s)
    inv = 1.0 / jnp.sum(e, axis=-1, keepdims=True)          # (tq, 1)

    # Dropout keep-test in the integer domain.
    keep = bits_ref[...] >= DROPOUT_THRESHOLD
    p = jnp.where(keep, e, 0.0).astype(jnp.bfloat16)

    out = jnp.dot(p, v, preferred_element_type=jnp.float32)  # (tq, D), f32 acc
    # Softmax 1/rowsum and the dropout 1/(1-p) scale applied once, broadcast
    # over the small (tq, D) output tile.
    o_ref[...] = (out * (inv * DROPOUT_SCALE)).astype(o_ref.dtype)


def attention_dropout(query, key, value, attn_mask, *, seed=0,
                      dropout_bits=None, tq_max=512):
    B, H, S, D = query.shape
    assert key.shape == (B, H, S, D) and value.shape == (B, H, S, D)
    assert attn_mask.shape[-2:] == (S, S)

    BH = B * H
    tq = min(tq_max, S)
    assert S % tq == 0 and tq % 8 == 0, "S must tile into multiple-of-8 query blocks"
    num_q = S // tq

    q2 = query.reshape(BH, S, D)
    k2 = key.reshape(BH, S, D)
    v2 = value.reshape(BH, S, D)
    m2 = jnp.broadcast_to(attn_mask, (1, 1, S, S)).reshape(S, S)

    if dropout_bits is None:
        dropout_bits = dropout_bits_for(seed, BH, S)

    kernel = functools.partial(_attn_kernel, scale=1.0 / math.sqrt(D))

    out = pl.pallas_call(
        kernel,
        out_shape=jax.ShapeDtypeStruct((BH, S, D), query.dtype),
        grid=(BH, num_q),
        in_specs=[
            pl.BlockSpec((None, tq, D), lambda bh, qi: (bh, qi, 0)),  # q tile
            pl.BlockSpec((None, S, D), lambda bh, qi: (bh, 0, 0)),    # full K
            pl.BlockSpec((None, S, D), lambda bh, qi: (bh, 0, 0)),    # full V
            pl.BlockSpec((tq, S), lambda bh, qi: (qi, 0)),            # mask rows
            pl.BlockSpec((None, tq, S), lambda bh, qi: (bh, qi, 0)),  # dropout bits
        ],
        out_specs=pl.BlockSpec((None, tq, D), lambda bh, qi: (bh, qi, 0)),
        compiler_params=pltpu.CompilerParams(
            dimension_semantics=("parallel", "parallel"),
        ),
    )(q2, k2, v2, m2, dropout_bits)
    return out.reshape(B, H, S, D)


def _reference(query, key, value, attn_mask, bits):
    """Pure-JAX reference using the same dropout bits and matching bf16 casts."""
    B, H, S, D = query.shape
    scale = 1.0 / math.sqrt(D)
    qb = (query * scale).astype(jnp.bfloat16)
    kb = key.astype(jnp.bfloat16)
    vb = value.astype(jnp.bfloat16)
    s = jnp.einsum("bhqd,bhkd->bhqk", qb, kb,
                   preferred_element_type=jnp.float32) + attn_mask
    s = s - s.max(axis=-1, keepdims=True)
    e = jnp.exp(s)
    inv = 1.0 / e.sum(axis=-1, keepdims=True)
    keep = bits.reshape(B, H, S, S) >= DROPOUT_THRESHOLD
    p = jnp.where(keep, e, 0.0).astype(jnp.bfloat16)
    out = jnp.einsum("bhqk,bhkd->bhqd", p, vb,
                     preferred_element_type=jnp.float32)
    return (out * (inv * DROPOUT_SCALE)).astype(query.dtype)


if __name__ == "__main__":
    # Small, lane-aligned stand-in for the module's (1, 3, 1111, 360).
    B, H, S, D = 1, 3, 256, 128
    k0, k1, k2, k3 = jax.random.split(jax.random.PRNGKey(0), 4)
    query = jax.random.normal(k0, (B, H, S, D), dtype=jnp.float32)
    key = jax.random.normal(k1, (B, H, S, D), dtype=jnp.float32)
    value = jax.random.normal(k2, (B, H, S, D), dtype=jnp.float32)
    attn_mask = jax.random.normal(k3, (1, 1, S, S), dtype=jnp.float32)

    bits = dropout_bits_for(0, B * H, S)
    out = attention_dropout(query, key, value, attn_mask, dropout_bits=bits)
    out = jax.block_until_ready(out)

    ref = _reference(query, key, value, attn_mask, bits)
    assert out.shape == (B, H, S, D)
    assert bool(jnp.isfinite(out).all())
    assert bool(jnp.allclose(out, ref, atol=1e-1, rtol=1e-1)), float(
        jnp.max(jnp.abs(out - ref)))
    print("KERNEL_OK")
</pallas_src>

<mosaic_0001>
module attributes {stable_mosaic.version = 11 : i64} {
  func.func @_attn_kernel(%arg0: i32, %arg1: i32, %arg2: memref<1x256x128xf32, #tpu.memory_space<vmem>>, %arg3: memref<1x256x128xf32, #tpu.memory_space<vmem>>, %arg4: memref<1x256x128xf32, #tpu.memory_space<vmem>>, %arg5: memref<256x256xf32, #tpu.memory_space<vmem>>, %arg6: memref<1x256x256xi32, #tpu.memory_space<vmem>>, %arg7: memref<1x256x128xf32, #tpu.memory_space<vmem>>) attributes {dimension_semantics = [#tpu.dimension_semantics<parallel>, #tpu.dimension_semantics<parallel>], iteration_bounds = array<i64: 3, 1>, scalar_prefetch = 0 : i64, scratch_operands = 0 : i64, tpu.core_type = #tpu.core_type<tc>, window_params = [{transform_indices = @transform_0, window_bounds = array<i64: 1, 256, 128>}, {transform_indices = @transform_1, window_bounds = array<i64: 1, 256, 128>}, {transform_indices = @transform_2, window_bounds = array<i64: 1, 256, 128>}, {transform_indices = @transform_3, window_bounds = array<i64: 256, 256>}, {transform_indices = @transform_4, window_bounds = array<i64: 1, 256, 256>}, {transform_indices = @transform_5, window_bounds = array<i64: 1, 256, 128>}]} {
    %c0 = arith.constant 0 : index
    %c0_0 = arith.constant 0 : index
    %c0_1 = arith.constant 0 : index
    %0 = vector.load %arg2[%c0, %c0_0, %c0_1] : memref<1x256x128xf32, #tpu.memory_space<vmem>>, vector<1x256x128xf32>
    %1 = vector.shape_cast %0 : vector<1x256x128xf32> to vector<256x128xf32>
    %cst = arith.constant 0.0883883461 : f32
    %2 = vector.broadcast %cst : f32 to vector<256x128xf32>
    %3 = arith.mulf %1, %2 : vector<256x128xf32>
    %4 = arith.truncf %3 : vector<256x128xf32> to vector<256x128xbf16>
    %c0_2 = arith.constant 0 : index
    %c0_3 = arith.constant 0 : index
    %c0_4 = arith.constant 0 : index
    %5 = vector.load %arg3[%c0_2, %c0_3, %c0_4] : memref<1x256x128xf32, #tpu.memory_space<vmem>>, vector<1x256x128xf32>
    %6 = vector.shape_cast %5 : vector<1x256x128xf32> to vector<256x128xf32>
    %7 = arith.truncf %6 : vector<256x128xf32> to vector<256x128xbf16>
    %c0_5 = arith.constant 0 : index
    %c0_6 = arith.constant 0 : index
    %c0_7 = arith.constant 0 : index
    %8 = vector.load %arg4[%c0_5, %c0_6, %c0_7] : memref<1x256x128xf32, #tpu.memory_space<vmem>>, vector<1x256x128xf32>
    %9 = vector.shape_cast %8 : vector<1x256x128xf32> to vector<256x128xf32>
    %10 = arith.truncf %9 : vector<256x128xf32> to vector<256x128xbf16>
    %cst_8 = arith.constant dense<0.000000e+00> : vector<256x256xf32>
    %11 = tpu.matmul %4, %7, %cst_8 {dimension_numbers = #tpu.dot_dimension_numbers<[1], [1], [0], [0], [0, 0, 1, 0], [], []>} : vector<256x128xbf16>, vector<256x128xbf16>, vector<256x256xf32> -> vector<256x256xf32>
    %c0_9 = arith.constant 0 : index
    %c0_10 = arith.constant 0 : index
    %12 = vector.load %arg5[%c0_9, %c0_10] : memref<256x256xf32, #tpu.memory_space<vmem>>, vector<256x256xf32>
    %13 = arith.addf %11, %12 : vector<256x256xf32>
    %cst_11 = arith.constant dense<0xFF800000> : vector<256xf32>
    %14 = vector.multi_reduction <maximumf>, %13, %cst_11 [1] : vector<256x256xf32> to vector<256xf32>
    %15 = vector.shape_cast %14 : vector<256xf32> to vector<256x1xf32>
    %16 = vector.broadcast %15 : vector<256x1xf32> to vector<256x256xf32>
    %17 = arith.subf %13, %16 : vector<256x256xf32>
    %18 = math.exp %17 : vector<256x256xf32>
    %cst_12 = arith.constant dense<0.000000e+00> : vector<256xf32>
    %19 = vector.multi_reduction <add>, %18, %cst_12 [1] : vector<256x256xf32> to vector<256xf32>
    %20 = vector.shape_cast %19 : vector<256xf32> to vector<256x1xf32>
    %cst_13 = arith.constant 1.000000e+00 : f32
    %21 = vector.broadcast %cst_13 : f32 to vector<256x1xf32>
    %22 = arith.divf %21, %20 : vector<256x1xf32>
    %c0_14 = arith.constant 0 : index
    %c0_15 = arith.constant 0 : index
    %c0_16 = arith.constant 0 : index
    %23 = vector.load %arg6[%c0_14, %c0_15, %c0_16] : memref<1x256x256xi32, #tpu.memory_space<vmem>>, vector<1x256x256xi32>
    %24 = vector.shape_cast %23 : vector<1x256x256xi32> to vector<256x256xi32>
    %c1288490189_i32 = arith.constant 1288490189 : i32
    %25 = vector.broadcast %c1288490189_i32 : i32 to vector<256x256xi32>
    %26 = arith.cmpi sge, %24, %25 : vector<256x256xi32>
    %cst_17 = arith.constant 0.000000e+00 : f32
    %27 = vector.broadcast %cst_17 : f32 to vector<256x256xf32>
    %28 = arith.select %26, %18, %27 : vector<256x256xi1>, vector<256x256xf32>
    %29 = arith.truncf %28 : vector<256x256xf32> to vector<256x256xbf16>
    %cst_18 = arith.constant dense<0.000000e+00> : vector<256x128xf32>
    %30 = tpu.matmul %29, %10, %cst_18 {dimension_numbers = #tpu.dot_dimension_numbers<[1], [0], [0], [1], [0, 0, 1, 1], [], []>} : vector<256x256xbf16>, vector<256x128xbf16>, vector<256x128xf32> -> vector<256x128xf32>
    %cst_19 = arith.constant 5.000000e+00 : f32
    %31 = vector.broadcast %cst_19 : f32 to vector<256x1xf32>
    %32 = arith.mulf %22, %31 : vector<256x1xf32>
    %33 = vector.broadcast %32 : vector<256x1xf32> to vector<256x128xf32>
    %34 = arith.mulf %30, %33 : vector<256x128xf32>
    %c0_20 = arith.constant 0 : index
    %c0_21 = arith.constant 0 : index
    %c0_22 = arith.constant 0 : index
    %35 = vector.load %arg7[%c0_20, %c0_21, %c0_22] : memref<1x256x128xf32, #tpu.memory_space<vmem>>, vector<1x256x128xf32>
    %36 = vector.shape_cast %35 : vector<1x256x128xf32> to vector<256x128xf32>
    %37 = vector.shape_cast %34 : vector<256x128xf32> to vector<1x256x128xf32>
    tpu.vector_store %arg7[%c0_20, %c0_21, %c0_22], %37 {strides = array<i32>} : memref<1x256x128xf32, #tpu.memory_space<vmem>>, vector<1x256x128xf32>,
    return
  }
  func.func @transform_0(%arg0: i32, %arg1: i32) -> (i32, i32, i32) {
    %c0_i32 = arith.constant 0 : i32
    %c0_i32_0 = arith.constant 0 : i32
    return %arg0, %arg1, %c0_i32 : i32, i32, i32
  }
  func.func @transform_1(%arg0: i32, %arg1: i32) -> (i32, i32, i32) {
    %c0_i32 = arith.constant 0 : i32
    %c0_i32_0 = arith.constant 0 : i32
    %c0_i32_1 = arith.constant 0 : i32
    return %arg0, %c0_i32, %c0_i32_0 : i32, i32, i32
  }
  func.func @transform_2(%arg0: i32, %arg1: i32) -> (i32, i32, i32) {
    %c0_i32 = arith.constant 0 : i32
    %c0_i32_0 = arith.constant 0 : i32
    %c0_i32_1 = arith.constant 0 : i32
    return %arg0, %c0_i32, %c0_i32_0 : i32, i32, i32
  }
  func.func @transform_3(%arg0: i32, %arg1: i32) -> (i32, i32) {
    %c0_i32 = arith.constant 0 : i32
    %c0_i32_0 = arith.constant 0 : i32
    return %arg1, %c0_i32 : i32, i32
  }
  func.func @transform_4(%arg0: i32, %arg1: i32) -> (i32, i32, i32) {
    %c0_i32 = arith.constant 0 : i32
    %c0_i32_0 = arith.constant 0 : i32
    return %arg0, %arg1, %c0_i32 : i32, i32, i32
  }
  func.func @transform_5(%arg0: i32, %arg1: i32) -> (i32, i32, i32) {
    %c0_i32 = arith.constant 0 : i32
    %c0_i32_0 = arith.constant 0 : i32
    return %arg0, %arg1, %c0_i32 : i32, i32, i32
  }
}

</mosaic_0001>

<bundles_post_ra>
// kernel: tpu_custom_call.1
= control target key start
LH: loop header
LB: loop body
LE: loop exit
PB: predicated region body
PF: predicated region fallthrough
CT: control target
= control target key end

     0   :  { %s3650_s0 = inlined_call_operand.hbm [shape: f32[3,256,128], index: 0, kind: input, shape index: {}]   ;;  %s3651_s1 = inlined_call_operand.hbm [shape: f32[3,256,128], index: 1, kind: input, shape index: {}]   ;;  %s3652_s2 = inlined_call_operand.hbm [shape: f32[3,256,128], index: 2, kind: input, shape index: {}]   ;;  %s3653_s3 = inlined_call_operand.hbm [shape: f32[256,256], index: 3, kind: input, shape index: {}]   ;;  %s3654_s4 = inlined_call_operand.hbm [shape: s32[3,256,256], index: 4, kind: input, shape index: {}]   ;;  %s3655_s5 = inlined_call_operand.hbm [shape: f32[3,256,128], index: 5, kind: output, shape index: {}]  }
   0x1   :  { %3685 = sst [smem:[#allocation34_spill]] %s3650_s0 }
   0x2   :  { %3686 = sst [smem:[#allocation35_spill]] %s3651_s1 }
   0x3   :  { %3687 = sst [smem:[#allocation36_spill]] %s3652_s2 }
   0x4   :  { %10 = vsyncpa [#allocation3], 0 }
   0x5   :  { %12 = vsyncpa [#allocation3 + $0x1], 0 }
   0x6   :  { %13 = vsyncpa [#allocation6], 0 }
   0x7   :  { %15 = vsyncpa [#allocation6 + $0x1], 0 }
   0x8   :  { %16 = vsyncpa [#allocation9], 0 }
   0x9   :  { %17 = vsyncpa [#allocation4], 0 }
   0xa   :  { %19 = vsyncpa [#allocation4 + $0x1], 0  ;;  %s2814_s18 = smov 0   ;;  %s2816_s19 = smov 0  }
   0xb   :  { %s2818_s20 = smov 0   ;;  %s2820_s21 = smov 0  }
   0xc   :  { %s2822_s22 = smov 0   ;;  %s2824_s23 = smov 0  }
   0xd LB: > { %3688 = sst [smem:[#allocation17_spill]] %s2750_s18  ;;  %s37_s24 = sadd.s32 1, %s2766_s22  ;;  %s2770_s23 = sphi %s2824_s23, %s25_s23   ;;  %s2766_s22 = sphi %s2822_s22, %s3749_s22   ;;  %s2762_s21 = sphi %s2820_s21, %s3748_s21   ;;  %s2758_s20 = sphi %s2818_s20, %s3747_s20   ;;  %s2754_s19 = sphi %s2816_s19, %s3746_s19   ;;  %s2750_s18 = sphi %s2814_s18, %s3745_s18  }
   0xe   : > { %s46_s25 = sadd.s32 1, %s2758_s20  ;;  %p39_p0 = scmp.ge.s32.totalorder %s37_s24, 3 }
   0xf   : > { %p3656_p1 = scmp.ne.s32.totalorder %s2758_s20, %s2754_s19  ;;  %p54_p2 = scmp.eq.s32.totalorder %s2770_s23, 0 }
  0x10   : > { %s3751_s24 = smov (%p39_p0, %s37_s24), 0  ;;  %p2278_p4 = scmp.lt.s32.totalorder %s2770_s23, 3 }
  0x11   : > { %3689 = sst [smem:[#allocation18_spill]] %s3751_s24  ;;  %p55_p3 = por %p54_p2, %p3656_p1 }
  0x12   : > { %s41_s26 = ssub.s32 %s2766_s22, %s3751_s24  ;;  %s234_s27 = sand.u32 1, %s2770_s23  }
  0x13   : > { %p44_p5 = scmp.eq.s32.totalorder %s41_s26, 0  ;;  %s3657_s28 = sand.u32 1, %s2758_s20  }
  0x14   : > { %s2860_s29 = sshll.u32 %s2766_s22, 12  ;;  %s2867_s6 = sshll.u32 %s3657_s28, 8 }
  0x15   : > { %s2863_s30 = scalar_select %p44_p5, %s2758_s20, %s46_s25  }
  0x16   : > { %s3691_s0 = sld [smem:[#allocation34_spill]]  ;;  %p2875_p6 = pnand %p2278_p4, %p55_p3 }
  0x17   : > { %3690 = sst [smem:[#allocation19_spill]] %s2863_s30  ;;  %s238_s11 = scalar_lea.vmem [#allocation2], %s2867_s6 }
  0x18   : > { %s3692_s10 = scalar_select %p2875_p6, 1, 0 }
  0x19   : > { %s247_s12 = sshll.u32 %s238_s11, 4  ;;  %s2884_s13 = scalar_lea.sflag [#allocation3], %s234_s27  ;;  %s2880_s12 = int_to_ptr.vmem [resolvable:$true] %s247_s12 }
  0x1a   : > { %p2890_p8 = pneg %p2875_p6 }
  0x1c   : > { %s2873_s9 = scalar_lea.hbm %s3691_s0, %s2860_s29  ;;  %s2533_s25 = scalar_lea.hbm %s3691_s0, 12288 }
  0x1d   : > { %s2528_s14 = scalar_lea.hbm %s2873_s9, 4096  ;;  %p2534_p11 = scmp.lt.u32.totalorder %s2873_s9, %s3691_s0 }
  0x1e   : > { %p2529_p7 = scmp.ne.s32.totalorder %s2873_s9, %s2528_s14  ;;  %p2535_p12 = scmp.lt.u32.totalorder %s2533_s25, %s2528_s14 }
  0x1f   : > { %s3693_s15 = scalar_select %p2890_p8, 1, 0 }
  0x20   : > { %p2531_p9 = pnand %p2890_p8, %p2529_p7  ;;  %p2536_p13 = por %p2535_p12, %p2534_p11 }
  0x21   : > { %p2537_p0 = scmp.lt.u32.totalorder %s2528_s14, %s2873_s9 }
  0x22   : > { %p2532_p10 = pneg %p2531_p9 }
  0x23   : > { %p2538_p2 = por %p2537_p0, %p2536_p13 }
  0x25   : > { %p2539_p3 = pnand %p2538_p2, %p2532_p10 }
  0x27   : > { %2542 = shalt.err (!%p2539_p3)
}
  0x28   : > { %s2543_s8 = scalar_lea.vmem %s2880_s12, 4096  ;;  %s2772_s11 = smov [#allocation2]  }
  0x29   : > { %p2544_p4 = scmp.ne.s32.totalorder %s2880_s12, %s2543_s8  ;;  %s2548_s16 = sshll.u32 %s2772_s11, 4  ;;  %s2549_s16 = int_to_ptr.vmem [resolvable:$false] %s2548_s16 }
  0x2a   : > { %s2550_s17 = scalar_lea.vmem %s2549_s16, 8192  ;;  %p2551_p9 = scmp.lt.s32.totalorder %s2880_s12, %s2549_s16 }
  0x2b   : > { %p2546_p5 = pnand %p2544_p4, %p2890_p8  ;;  %p2552_p1 = scmp.lt.s32.totalorder %s2550_s17, %s2543_s8 }
  0x2d   : > { %p2547_p7 = pneg %p2546_p5  ;;  %p2553_p11 = por %p2552_p1, %p2551_p9 }
  0x2f   : > { %p2554_p12 = pnand %p2553_p11, %p2547_p7 }
  0x31   : > { %2557 = shalt.err (!%p2554_p12)
}
  0x32   : > { %s3658_s14 = smov 128   ;;  %s3660_s25 = smov 8  }
  0x33   : > { %2263 = dma.hbm_to_vmem [thread:$0]  (!%p2875_p6), %s2873_s9, 4096, %s2880_s12, %s2884_s13, %s3658_s14, %s3658_s14, %s3660_s25  }
  0x34   : > { %s3694_s1 = sld [smem:[#allocation35_spill]]  ;;  %s261_s11 = scalar_lea.vmem [#allocation5], %s2867_s6 }
  0x35   : > { %s268_s16 = sshll.u32 %s261_s11, 4  ;;  %s2928_s17 = scalar_lea.sflag [#allocation6], %s234_s27  ;;  %s2924_s16 = int_to_ptr.vmem [resolvable:$true] %s268_s16 }
  0x3a   : > { %s2921_s8 = scalar_lea.hbm %s3694_s1, %s2860_s29  ;;  %s2563_s26 = scalar_lea.hbm %s3694_s1, 12288 }
  0x3b   : > { %s2558_s28 = scalar_lea.hbm %s2921_s8, 4096  ;;  %p2564_p0 = scmp.lt.u32.totalorder %s2921_s8, %s3694_s1 }
  0x3c   : > { %p2559_p1 = scmp.ne.s32.totalorder %s2921_s8, %s2558_s28  ;;  %p2565_p2 = scmp.lt.u32.totalorder %s2563_s26, %s2558_s28 }
  0x3d   : > { %p2567_p4 = scmp.lt.u32.totalorder %s2558_s28, %s2921_s8 }
  0x3e   : > { %p2561_p10 = pnand %p2559_p1, %p2890_p8  ;;  %p2566_p3 = por %p2565_p2, %p2564_p0 }
  0x40   : > { %p2562_p13 = pneg %p2561_p10  ;;  %p2568_p5 = por %p2567_p4, %p2566_p3 }
  0x42   : > { %p2569_p7 = pnand %p2568_p5, %p2562_p13 }
  0x44   : > { %2572 = shalt.err (!%p2569_p7)
}
  0x45   : > { %s2573_s27 = scalar_lea.vmem %s2924_s16, 4096  ;;  %s2775_s11 = smov [#allocation5]  }
  0x46   : > { %p2574_p9 = scmp.ne.s32.totalorder %s2924_s16, %s2573_s27  ;;  %s2578_s9 = sshll.u32 %s2775_s11, 4  ;;  %s2579_s9 = int_to_ptr.vmem [resolvable:$false] %s2578_s9 }
  0x47   : > { %s2580_s14 = scalar_lea.vmem %s2579_s9, 8192  ;;  %p2581_p1 = scmp.lt.s32.totalorder %s2924_s16, %s2579_s9 }
  0x48   : > { %p2576_p11 = pnand %p2574_p9, %p2890_p8  ;;  %p2582_p10 = scmp.lt.s32.totalorder %s2580_s14, %s2573_s27 }
  0x4a   : > { %p2577_p12 = pneg %p2576_p11  ;;  %p2583_p0 = por %p2582_p10, %p2581_p1 }
  0x4c   : > { %p2584_p2 = pnand %p2583_p0, %p2577_p12 }
  0x4e   : > { %2587 = shalt.err (!%p2584_p2)
}
  0x4f   : > { %s3695_s28 = smov 128   ;;  %s2956_s12 = sadd.s32 4294967295, %s2770_s23  }
  0x50   : > { %2266 = dma.hbm_to_vmem [thread:$0]  (!%p2875_p6), %s2921_s8, 4096, %s2924_s16, %s2928_s17, %s3695_s28, %s3695_s28, %s3660_s25  }
  0x51   : > { %s1953_s26 = sadd.s32 4294967294, %s2770_s23   ;;  %p59_p13 = scmp.ne.s32.totalorder %s2754_s19, %s2750_s18 }
  0x52   : > { %p3663_p3 = scmp.eq.s32.totalorder %s2956_s12, 0  ;;  %p191_p4 = scmp.eq.s32.totalorder %s2956_s12, 2 }
  0x53   : > { %p197_p5 = scmp.eq.s32.totalorder %s1953_s26, 2  ;;  %p1954_p9 = scmp.ge.s32.totalorder %s2770_s23, 1 }
  0x54   : > { %p2965_p7 = por %p3663_p3, %p59_p13  ;;  %p3697_p11 = scmp.ne.s32.totalorder %s2758_s20, %s2754_s19 }
  0x55   : > { %p2977_p1 = por %p197_p5, %p59_p13  ;;  %p204_p10 = scmp.lt.s32.totalorder %s2770_s23, 4 }
  0x56   : > { %s3696_s7 = scalar_select %p2965_p7, 1, 0 }
  0x57   : > { %p2973_p12 = por %p191_p4, %p3697_p11  ;;  %p2982_p0 = pnand %p1954_p9, %p204_p10 }
  0x58   : > { %s3699_s16 = scalar_select %p2977_p1, 1, 0 }
  0x59   : > { %s3698_s8 = scalar_select %p2973_p12, 1, 0 }
  0x5a   : > { %3700 = sst [smem:[#allocation20_spill]] %s3699_s16  ;;  %s2776_s11 = smov [#allocation8]  }
  0x5b   : > { %s3701_s27 = scalar_select %p2982_p0, 1, 0 }
  0x5c   : > { %s220_s9 = sshll.u32 %s2776_s11, 4  ;;  %p2256_p2 = pneg %p2982_p0  ;;  %s2986_s9 = int_to_ptr.vmem [resolvable:$true] %s220_s9 }
  0x5d   : > { %s3702_s2 = sld [smem:[#allocation36_spill]]  ;;  %s282_s0 = scalar_lea.vmem [#allocation7], %s2867_s6 }
  0x5e   : > { %s289_s1 = sshll.u32 %s282_s0, 4  ;;  %p2999_p13 = pnand %p2256_p2, %p3663_p3  ;;  %s3003_s1 = int_to_ptr.vmem [resolvable:$true] %s289_s1 }
  0x60   : > { %s3703_s24 = scalar_select %p2999_p13, 1, 0 }
  0x63   : > { %s2994_s25 = scalar_lea.hbm %s3702_s2, %s2860_s29  ;;  %s2593_s26 = scalar_lea.hbm %s3702_s2, 12288 }
  0x64   : > { %s2588_s11 = scalar_lea.hbm %s2994_s25, 4096  ;;  %p2594_p11 = scmp.lt.u32.totalorder %s2994_s25, %s3702_s2 }
  0x65   : > { %p2589_p4 = scmp.ne.s32.totalorder %s2994_s25, %s2588_s11  ;;  %p2595_p10 = scmp.lt.u32.totalorder %s2593_s26, %s2588_s11 }
  0x66   : > { %p2597_p3 = scmp.lt.u32.totalorder %s2588_s11, %s2994_s25 }
  0x67   : > { %p2591_p5 = pnand %p2589_p4, %p2890_p8  ;;  %p2596_p2 = por %p2595_p10, %p2594_p11 }
  0x69   : > { %p2592_p9 = pneg %p2591_p5  ;;  %p2598_p1 = por %p2597_p3, %p2596_p2 }
  0x6b   : > { %p2599_p12 = pnand %p2598_p1, %p2592_p9 }
  0x6d   : > { %2602 = shalt.err (!%p2599_p12)
}
  0x6e   : > { %s2603_s0 = scalar_lea.vmem %s3003_s1, 4096  ;;  %s2777_s6 = smov [#allocation7]  }
  0x6f   : > { %p2604_p4 = scmp.ne.s32.totalorder %s3003_s1, %s2603_s0  ;;  %s2608_s29 = sshll.u32 %s2777_s6, 4  ;;  %s2609_s29 = int_to_ptr.vmem [resolvable:$false] %s2608_s29 }
  0x70   : > { %s2610_s30 = scalar_lea.vmem %s2609_s29, 8192  ;;  %p2611_p0 = scmp.lt.s32.totalorder %s3003_s1, %s2609_s29 }
  0x71   : > { %p2606_p5 = pnand %p2604_p4, %p2890_p8  ;;  %p2612_p13 = scmp.lt.s32.totalorder %s2610_s30, %s2603_s0 }
  0x73   : > { %p2607_p7 = pneg %p2606_p5  ;;  %p2613_p11 = por %p2612_p13, %p2611_p0 }
  0x75   : > { %p2614_p10 = pnand %p2613_p11, %p2607_p7 }
  0x77   : > { %2617 = shalt.err (!%p2614_p10)
}
  0x78   : > { %s3704_s16 = smov 8   ;;  %s3705_s11 = sand.u32 1, %s2758_s20  }
  0x79   : > { %2269 = dma.hbm_to_vmem [thread:$0]  (!%p2875_p6), %s2994_s25, 4096, %s3003_s1, %s2928_s17, %s3695_s28, %s3695_s28, %s3704_s16  }
  0x7a   : > { %s1966_s14 = sshll.u32 %s3705_s11, 9  ;;  %s2618_s0 = scalar_lea.hbm %s3653_s3, 8192 }
  0x7b   : > { %p2619_p3 = scmp.ne.s32.totalorder %s3653_s3, %s2618_s0  ;;  %p3706_p7 = scmp.ne.s32.totalorder %s3703_s24, 0 }
  0x7c   : > { %p2625_p13 = scmp.lt.u32.totalorder %s2618_s0, %s3653_s3 }
  0x7d   : > { %p2620_p12 = pneg %p3706_p7 }
  0x7f   : > { %p2621_p1 = pnand %p2620_p12, %p2619_p3 }
  0x81   : > { %p2622_p0 = pneg %p2621_p1 }
  0x83   : > { %p2627_p9 = pnand %p2625_p13, %p2622_p0 }
  0x85   : > { %2630 = shalt.err (!%p2627_p9)
}
  0x86   : > { %s2631_s1 = scalar_lea.vmem %s2986_s9, 8192  ;;  %p2639_p11 = scmp.lt.s32.totalorder %s2986_s9, %s2986_s9 }
  0x87   : > { %p2632_p2 = scmp.ne.s32.totalorder %s2986_s9, %s2631_s1  ;;  %p2640_p10 = scmp.lt.s32.totalorder %s2631_s1, %s2631_s1 }
  0x89   : > { %p2634_p4 = pnand %p2632_p2, %p2620_p12  ;;  %p2641_p6 = por %p2640_p10, %p2639_p11 }
  0x8b   : > { %p2635_p5 = pneg %p2634_p4 }
  0x8d   : > { %p2642_p8 = pnand %p2641_p6, %p2635_p5 }
  0x8f   : > { %2645 = shalt.err (!%p2642_p8)
}
  0x90   : > { %s2778_s25 = smov 256   ;;  %s2779_s2 = smov 16  }
  0x91   : > { %2259 = dma.hbm_to_vmem [thread:$0]  (!%p3706_p7), %s3653_s3, 8192, %s2986_s9, [#allocation9], %s2778_s25, %s2778_s25, %s2779_s2  }
  0x92   : > { %s2080_s28 = sshll.u32 %s2766_s22, 13  ;;  %s303_s6 = scalar_lea.vmem [#allocation10], %s1966_s14 }
  0x93   : > { %s3060_s26 = scalar_lea.hbm %s3654_s4, %s2080_s28  ;;  %s313_s0 = sshll.u32 %s303_s6, 4  ;;  %s3062_s0 = int_to_ptr.vmem [resolvable:$true] %s313_s0 }
  0x94   : > { %s2646_s24 = scalar_lea.hbm %s3060_s26, 8192  ;;  %p3707_p8 = scmp.ne.s32.totalorder %s3693_s15, 0 }
  0x95   : > { %p2647_p6 = scmp.ne.s32.totalorder %s3060_s26, %s2646_s24  ;;  %s2651_s30 = scalar_lea.hbm %s3654_s4, 24576 }
  0x96   : > { %p2652_p7 = scmp.lt.u32.totalorder %s3060_s26, %s3654_s4  ;;  %p2653_p1 = scmp.lt.u32.totalorder %s2651_s30, %s2646_s24 }
  0x97   : > { %p2649_p3 = pnand %p2647_p6, %p3707_p8  ;;  %p2655_p13 = scmp.lt.u32.totalorder %s2646_s24, %s3060_s26 }
  0x98   : > { %p2654_p0 = por %p2653_p1, %p2652_p7 }
  0x99   : > { %p2650_p12 = pneg %p2649_p3 }
  0x9a   : > { %p2656_p9 = por %p2655_p13, %p2654_p0 }
  0x9c   : > { %p2657_p2 = pnand %p2656_p9, %p2650_p12 }
  0x9e   : > { %2660 = shalt.err (!%p2657_p2)
}
  0x9f   : > { %s2661_s14 = scalar_lea.vmem %s3062_s0, 8192  ;;  %s2780_s17 = smov [#allocation10]  }
  0xa0   : > { %p2662_p4 = scmp.ne.s32.totalorder %s3062_s0, %s2661_s14  ;;  %s2666_s28 = sshll.u32 %s2780_s17, 4  ;;  %s2667_s28 = int_to_ptr.vmem [resolvable:$false] %s2666_s28 }
  0xa1   : > { %s2668_s16 = scalar_lea.vmem %s2667_s28, 16384  ;;  %p2669_p10 = scmp.lt.s32.totalorder %s3062_s0, %s2667_s28 }
  0xa2   : > { %p2664_p5 = pnand %p2662_p4, %p3707_p8  ;;  %p2670_p6 = scmp.lt.s32.totalorder %s2668_s16, %s2661_s14 }
  0xa4   : > { %p2665_p11 = pneg %p2664_p5  ;;  %p2671_p3 = por %p2670_p6, %p2669_p10 }
  0xa6   : > { %p2672_p7 = pnand %p2671_p3, %p2665_p11 }
  0xa8   : > { %2675 = shalt.err (!%p2672_p7)
}
  0xa9   : > { %p3708_p12 = scmp.ne.s32.totalorder %s3692_s10, 0  ;;  %p3709_p8 = scmp.ne.s32.totalorder %s3701_s27, 0 }
  0xab   : > { %2272 = dma.hbm_to_vmem [thread:$0]  (!%p3708_p12), %s3060_s26, 8192, %s3062_s0, %s2884_s13, %s2778_s25, %s2778_s25, %s2779_s2  }
  0xac   : > { %325 = sbr.rel (%p3709_p8) target bundleno = 995 (0x3e3), region = 40 }
  0xb3   : > { %s327_s15 = sand.u32 1, %s2956_s12   ;;  %s3093_s11 = sand.u32 1, %s2754_s19  }
  0xb4   : > { %s3096_s6 = sshll.u32 %s3093_s11, 8  ;;  %s328_s10 = scalar_lea.sflag [#allocation3], %s327_s15 }
  0xb5   : > { %s3099_s24 = scalar_lea.vmem [#allocation2], %s3096_s6  ;;  %p3710_p1 = scmp.ne.s32.totalorder %s3696_s7, 0 }
  0xb7   : > { %2729 = dma.done.wait (%p3710_p1), %s328_s10, 4096  }
  0xb8   : > { %2731 = vsyncadd (%p3710_p1), %s328_s10, 4294963200  ;;  %s337_s13 = scalar_lea.sflag [#allocation6], %s327_s15  ;;  %s3106_s27 = scalar_lea.vmem [#allocation5], %s3096_s6 }
  0xb9   : > { %2733 = dma.done.wait (%p3710_p1), %s337_s13, 8192  }
  0xba   : > { %2735 = vsyncadd (%p3710_p1), %s337_s13, 4294959104  ;;  %s3113_s25 = scalar_lea.vmem [#allocation7], %s3096_s6  ;;  %p3711_p0 = scmp.eq.s32.totalorder %s2956_s12, 0 }
  0xbc   : > { %2737 = dma.done.wait (%p3711_p0), [#allocation9], 8192   ;;  %p3712_p13 = pmov %p3711_p0 }
  0xbd   : > { %s1974_s2 = sshll.u32 %s3093_s11, 9 }
  0xbe   : > { %2739 = vsyncadd (%p3712_p13), [#allocation9], 4294959104  ;;  %s3120_s26 = scalar_lea.vmem [#allocation10], %s1974_s2 }
  0xbf   : > { %2741 = dma.done.wait (%p3710_p1), %s328_s10, 8192  }
  0xc0   : > { %2743 = vsyncadd (%p3710_p1), %s328_s10, 4294959104  ;;  %v505_v0 = vld [vmem:[%s3106_s27 + $0x80] sm:$0xff]  ;;  %v506_v1 = vld [vmem:[%s3106_s27 + $0x88] sm:$0xff]  ;;  %s3561_s12 = scalar_lea.vmem [#allocation11], %s3096_s6  ;;  %s2081_s7 = sshll.u32 %s2762_s21, 12 }
  0xc1   : > { %v489_v2 = vld [vmem:[%s3106_s27] sm:$0xff]  ;;  %v529_v3 = vpack.c.bf16 %v506_v1, %v505_v0  ;;  %v490_v4 = vld [vmem:[%s3106_s27 + $0x8] sm:$0xff]  ;;  %v507_v5 = vld [vmem:[%s3106_s27 + $0x90] sm:$0xff]  ;;  %s1787_s0 = sshll.u32 %s3561_s12, 4  ;;  %s3598_s30 = scalar_lea.hbm %s3655_s5, %s2081_s7  ;;  %s3600_s0 = int_to_ptr.vmem [resolvable:$true] %s1787_s0 }
  0xc2   : > { %v508_v6 = vld [vmem:[%s3106_s27 + $0x98] sm:$0xff]  ;;  %v521_v7 = vpack.c.bf16 %v490_v4, %v489_v2  ;;  %v491_v9 = vld [vmem:[%s3106_s27 + $0x10] sm:$0xff]  ;;  %v509_v11 = vld [vmem:[%s3106_s27 + $0xa0] sm:$0xff]  ;;  %s1772_s1 = scalar_lea.sflag [#allocation4], %s3093_s11  ;;  %s2676_s21 = scalar_lea.vmem %s3600_s0, 4096 }
  0xc3   : > { %v530_v8 = vpack.c.bf16 %v508_v6, %v507_v5  ;;  %2082 = vmatprep.subr.bf16.mxu0 %v529_v3  ;;  %v492_v10 = vld [vmem:[%s3106_s27 + $0x18] sm:$0xff]  ;;  %v510_v12 = vld [vmem:[%s3106_s27 + $0xa8] sm:$0xff]  ;;  %v409_v15 = vld [vmem:[%s3099_s24] sm:$0xff]  ;;  %p2677_p9 = scmp.ne.s32.totalorder %s3600_s0, %s2676_s21  ;;  %p3739_p2 = scmp.ne.s32.totalorder %s3698_s8, 0 }
  0xc4   : > { %2083 = vmatpush3.bf16.xpose.msra.mxu0 %v521_v7  ;;  %v522_v13 = vpack.c.bf16 %v492_v10, %v491_v9  ;;  %v531_v14 = vpack.c.bf16 %v510_v12, %v509_v11  ;;  %v410_v16 = vld [vmem:[%s3099_s24 + $0x8] sm:$0xff]  ;;  %v441_v17 = vmul.f32 0.088388346, %v409_v15  ;;  %v493_v19 = vld [vmem:[%s3106_s27 + $0x20] sm:$0xff]  ;;  %v511_v21 = vld [vmem:[%s3106_s27 + $0xb0] sm:$0xff]  ;;  %s2781_s18 = smov [#allocation11]  }
  0xc5   : > { %2084 = vmatprep.subr.bf16.mxu0 %v530_v8  ;;  %v442_v18 = vmul.f32 0.088388346, %v410_v16  ;;  %v494_v20 = vld [vmem:[%s3106_s27 + $0x28] sm:$0xff]  ;;  %v512_v22 = vld [vmem:[%s3106_s27 + $0xb8] sm:$0xff]  ;;  %v495_v26 = vld [vmem:[%s3106_s27 + $0x30] sm:$0xff]  ;;  %p2678_p4 = pnand %p2677_p9, %p3739_p2  ;;  %s2680_s14 = sshll.u32 %s2781_s18, 4  ;;  %s2681_s14 = int_to_ptr.vmem [resolvable:$false] %s2680_s14 }
  0xc6   : > { %v523_v24 = vpack.c.bf16 %v494_v20, %v493_v19  ;;  %v532_v25 = vpack.c.bf16 %v512_v22, %v511_v21  ;;  %v496_v27 = vld [vmem:[%s3106_s27 + $0x38] sm:$0xff]  ;;  %v513_v28 = vld [vmem:[%s3106_s27 + $0xc0] sm:$0xff]  ;;  %v514_v29 = vld [vmem:[%s3106_s27 + $0xc8] sm:$0xff]  ;;  %s2682_s17 = scalar_lea.vmem %s2681_s14, 8192  ;;  %p2683_p11 = scmp.lt.s32.totalorder %s3600_s0, %s2681_s14 }
  0xc7   : > { %v473_v23 = vpack.c.bf16 %v442_v18, %v441_v17  ;;  %v524_v30 = vpack.c.bf16 %v496_v27, %v495_v26  ;;  %v533_v31 = vpack.c.bf16 %v514_v29, %v513_v28  ;;  %v497_v32 = vld [vmem:[%s3106_s27 + $0x40] sm:$0xff]  ;;  %v498_v33 = vld [vmem:[%s3106_s27 + $0x48] sm:$0xff]  ;;  %v515_v34 = vld [vmem:[%s3106_s27 + $0xd0] sm:$0xff]  ;;  %p2679_p5 = pneg %p2678_p4  ;;  %p2684_p10 = scmp.lt.s32.totalorder %s2682_s17, %s2676_s21 }
  0xc8   : > { %v516_v35 = vld [vmem:[%s3106_s27 + $0xd8] sm:$0xff]  ;;  %v525_v36 = vpack.c.bf16 %v498_v33, %v497_v32  ;;  %v499_v38 = vld [vmem:[%s3106_s27 + $0x50] sm:$0xff]  ;;  %v517_v40 = vld [vmem:[%s3106_s27 + $0xe0] sm:$0xff] }
  0xc9   : > { %2098 = vmatprep.mubr.bf16.mxu0 %v473_v23  ;;  %v534_v37 = vpack.c.bf16 %v516_v35, %v515_v34  ;;  %v500_v39 = vld [vmem:[%s3106_s27 + $0x58] sm:$0xff]  ;;  %v518_v41 = vld [vmem:[%s3106_s27 + $0xe8] sm:$0xff]  ;;  %v501_v44 = vld [vmem:[%s3106_s27 + $0x60] sm:$0xff]  ;;  %p2685_p6 = por %p2684_p10, %p2683_p11 }
  0xca   : > { %v526_v42 = vpack.c.bf16 %v500_v39, %v499_v38  ;;  %v535_v43 = vpack.c.bf16 %v518_v41, %v517_v40  ;;  %v502_v45 = vld [vmem:[%s3106_s27 + $0x68] sm:$0xff]  ;;  %v519_v46 = vld [vmem:[%s3106_s27 + $0xf0] sm:$0xff]  ;;  %v520_v47 = vld [vmem:[%s3106_s27 + $0xf8] sm:$0xff] }
  0xcb   : > { %v527_v48 = vpack.c.bf16 %v502_v45, %v501_v44  ;;  %v536_v49 = vpack.c.bf16 %v520_v47, %v519_v46  ;;  %v503_v50 = vld [vmem:[%s3106_s27 + $0x70] sm:$0xff]  ;;  %v504_v51 = vld [vmem:[%s3106_s27 + $0x78] sm:$0xff]  ;;  %v413_v58 = vld [vmem:[%s3099_s24 + $0x20] sm:$0xff]  ;;  %p2686_p3 = pnand %p2685_p6, %p2679_p5 }
  0xcc   : > { %2085 = vmatpush3.bf16.xpose.msra.mxu0 %v522_v13  ;;  %v528_v52 = vpack.c.bf16 %v504_v51, %v503_v50  ;;  %v411_v53 = vld [vmem:[%s3099_s24 + $0x10] sm:$0xff]  ;;  %v412_v54 = vld [vmem:[%s3099_s24 + $0x18] sm:$0xff]  ;;  %v414_v59 = vld [vmem:[%s3099_s24 + $0x28] sm:$0xff]  ;;  %v445_v60 = vmul.f32 0.088388346, %v413_v58 }
  0xcd   : > { %2086 = vmatprep.subr.bf16.mxu0 %v531_v14  ;;  %v443_v55 = vmul.f32 0.088388346, %v411_v53  ;;  %v444_v56 = vmul.f32 0.088388346, %v412_v54  ;;  %v446_v61 = vmul.f32 0.088388346, %v414_v59 }
  0xce   : > { %v415_v63 = vld [vmem:[%s3099_s24 + $0x30] sm:$0xff]  ;;  %v416_v0 = vld [vmem:[%s3099_s24 + $0x38] sm:$0xff]  ;;  %v417_v4 = vld [vmem:[%s3099_s24 + $0x40] sm:$0xff] }
  0xcf   : > { %v474_v57 = vpack.c.bf16 %v444_v56, %v443_v55  ;;  %v475_v62 = vpack.c.bf16 %v446_v61, %v445_v60  ;;  %v447_v1 = vmul.f32 0.088388346, %v415_v63  ;;  %v448_v2 = vmul.f32 0.088388346, %v416_v0  ;;  %v418_v5 = vld [vmem:[%s3099_s24 + $0x48] sm:$0xff]  ;;  %v419_v9 = vld [vmem:[%s3099_s24 + $0x50] sm:$0xff] }
  0xd0   : > { %v449_v6 = vmul.f32 0.088388346, %v417_v4  ;;  %v450_v7 = vmul.f32 0.088388346, %v418_v5  ;;  %v420_v10 = vld [vmem:[%s3099_s24 + $0x58] sm:$0xff]  ;;  %v421_v14 = vld [vmem:[%s3099_s24 + $0x60] sm:$0xff] }
  0xd1   : > { %v476_v3 = vpack.c.bf16 %v448_v2, %v447_v1  ;;  %v451_v11 = vmul.f32 0.088388346, %v419_v9  ;;  %v452_v12 = vmul.f32 0.088388346, %v420_v10  ;;  %v422_v15 = vld [vmem:[%s3099_s24 + $0x68] sm:$0xff]  ;;  %v423_v19 = vld [vmem:[%s3099_s24 + $0x70] sm:$0xff] }
  0xd2   : > { %v477_v8 = vpack.c.bf16 %v450_v7, %v449_v6  ;;  %v453_v16 = vmul.f32 0.088388346, %v421_v14  ;;  %v454_v17 = vmul.f32 0.088388346, %v422_v15  ;;  %v424_v20 = vld [vmem:[%s3099_s24 + $0x78] sm:$0xff]  ;;  %v427_v29 = vld [vmem:[%s3099_s24 + $0x90] sm:$0xff] }
  0xd3   : > { %v478_v13 = vpack.c.bf16 %v452_v12, %v451_v11  ;;  %v455_v21 = vmul.f32 0.088388346, %v423_v19  ;;  %v456_v22 = vmul.f32 0.088388346, %v424_v20  ;;  %v429_v34 = vld [vmem:[%s3099_s24 + $0xa0] sm:$0xff]  ;;  %v430_v35 = vld [vmem:[%s3099_s24 + $0xa8] sm:$0xff] }
  0xd4   : > { %2087 = vmatpush3.bf16.xpose.msra.mxu0 %v523_v24  ;;  %v479_v18 = vpack.c.bf16 %v454_v17, %v453_v16  ;;  %v425_v24 = vld [vmem:[%s3099_s24 + $0x80] sm:$0xff]  ;;  %v431_v39 = vld [vmem:[%s3099_s24 + $0xb0] sm:$0xff]  ;;  %v432_v40 = vld [vmem:[%s3099_s24 + $0xb8] sm:$0xff] }
  0xd5   : > { %2088 = vmatprep.subr.bf16.mxu0 %v532_v25  ;;  %v426_v25 = vld [vmem:[%s3099_s24 + $0x88] sm:$0xff]  ;;  %v457_v26 = vmul.f32 0.088388346, %v425_v24  ;;  %v463_v41 = vmul.f32 0.088388346, %v431_v39  ;;  %v433_v44 = vld [vmem:[%s3099_s24 + $0xc0] sm:$0xff] }
  0xd6   : > { %v458_v27 = vmul.f32 0.088388346, %v426_v25  ;;  %v434_v45 = vld [vmem:[%s3099_s24 + $0xc8] sm:$0xff]  ;;  %v465_v46 = vmul.f32 0.088388346, %v433_v44  ;;  %v436_v50 = vld [vmem:[%s3099_s24 + $0xd8] sm:$0xff] }
  0xd7   : > { %v466_v47 = vmul.f32 0.088388346, %v434_v45  ;;  %v437_v54 = vld [vmem:[%s3099_s24 + $0xe0] sm:$0xff]  ;;  %v438_v55 = vld [vmem:[%s3099_s24 + $0xe8] sm:$0xff]  ;;  %v439_v59 = vld [vmem:[%s3099_s24 + $0xf0] sm:$0xff] }
  0xd8   : > { %v481_v28 = vpack.c.bf16 %v458_v27, %v457_v26  ;;  %v469_v56 = vmul.f32 0.088388346, %v437_v54  ;;  %v440_v60 = vld [vmem:[%s3099_s24 + $0xf8] sm:$0xff]  ;;  %v471_v61 = vmul.f32 0.088388346, %v439_v59  ;;  %v585_v0 = vld [vmem:[#allocation8] sm:$0xff] }
  0xd9   : > { %v586_v1 = vld [vmem:[#allocation8 + $0x8] sm:$0xff]  ;;  %v587_v2 = vld [vmem:[#allocation8 + $0x10] sm:$0xff]  ;;  %v553_v5 = vld [vmem:[%s3113_s25 + $0x80] sm:$0xff] }
  0xda   : > { %v554_v6 = vld [vmem:[%s3113_s25 + $0x88] sm:$0xff]  ;;  %v537_v7 = vld [vmem:[%s3113_s25] sm:$0xff]  ;;  %v555_v12 = vld [vmem:[%s3113_s25 + $0x90] sm:$0xff] }
  0xdb   : > { %v577_v10 = vpack.c.bf16 %v554_v6, %v553_v5  ;;  %v538_v11 = vld [vmem:[%s3113_s25 + $0x8] sm:$0xff]  ;;  %v540_v19 = vld [vmem:[%s3113_s25 + $0x18] sm:$0xff]  ;;  %v557_v20 = vld [vmem:[%s3113_s25 + $0xa0] sm:$0xff] }
  0xdc   : > { %2089 = vmatpush3.bf16.xpose.msra.mxu0 %v524_v30  ;;  %v428_v30 = vld [vmem:[%s3099_s24 + $0x98] sm:$0xff]  ;;  %v569_v16 = vpack.c.bf16 %v538_v11, %v537_v7  ;;  %v593_v45 = vld [vmem:[#allocation8 + $0x40] sm:$0xff]  ;;  %v559_v59 = vld [vmem:[%s3113_s25 + $0xb0] sm:$0xff] }
  0xdd   : > { %2090 = vmatprep.subr.bf16.mxu0 %v533_v31  ;;  %v459_v31 = vmul.f32 0.088388346, %v427_v29  ;;  %v460_v32 = vmul.f32 0.088388346, %v428_v30  ;;  %2130 = vmatprep.subr.bf16.mxu1 %v577_v10  ;;  %v542_v29 = vld [vmem:[%s3113_s25 + $0x28] sm:$0xff]  ;;  %v589_v30 = vld [vmem:[#allocation8 + $0x20] sm:$0xff] }
  0xde   : > { %2131 = vmatpush3.bf16.msra.mxu1 %v569_v16  ;;  %v599_v5 = vld [vmem:[#allocation8 + $0x70] sm:$0xff]  ;;  %v561_v6 = vld [vmem:[%s3113_s25 + $0xc0] sm:$0xff]  ;;  %v562_v7 = vld [vmem:[%s3113_s25 + $0xc8] sm:$0xff] }
  0xdf   : > { %v482_v33 = vpack.c.bf16 %v460_v32, %v459_v31  ;;  %v590_v31 = vld [vmem:[#allocation8 + $0x28] sm:$0xff]  ;;  %v600_v11 = vld [vmem:[#allocation8 + $0x78] sm:$0xff] }
  0xe4   : > { %2091 = vmatpush3.bf16.xpose.msra.mxu0 %v525_v36  ;;  %v461_v36 = vmul.f32 0.088388346, %v429_v34 }
  0xe5   : > { %2092 = vmatprep.subr.bf16.mxu0 %v534_v37  ;;  %v462_v37 = vmul.f32 0.088388346, %v430_v35 }
  0xe7   : > { %v483_v38 = vpack.c.bf16 %v462_v37, %v461_v36  ;;  %v591_v37 = vld [vmem:[#allocation8 + $0x30] sm:$0xff] }
  0xec   : > { %2093 = vmatpush3.bf16.xpose.msra.mxu0 %v526_v42  ;;  %v464_v42 = vmul.f32 0.088388346, %v432_v40 }
  0xed   : > { %2094 = vmatprep.subr.bf16.mxu0 %v535_v43 }
  0xee   : > { %v484_v43 = vpack.c.bf16 %v464_v42, %v463_v41 }
  0xf4   : > { %2095 = vmatpush3.bf16.xpose.msra.mxu0 %v527_v48  ;;  %v485_v48 = vpack.c.bf16 %v466_v47, %v465_v46  ;;  %v594_v46 = vld [vmem:[#allocation8 + $0x48] sm:$0xff] }
  0xf5   : > { %2096 = vmatprep.subr.bf16.mxu0 %v536_v49  ;;  %v435_v49 = vld [vmem:[%s3099_s24 + $0xd0] sm:$0xff] }
  0xf6   : > { %v467_v51 = vmul.f32 0.088388346, %v435_v49 }
  0xfc   : > { %2097 = vmatpush3.bf16.xpose.msra.mxu0 %v528_v52  ;;  %v468_v52 = vmul.f32 0.088388346, %v436_v50 }
  0xfe   : > { %v486_v53 = vpack.c.bf16 %v468_v52, %v467_v51  ;;  %v596_v52 = vld [vmem:[#allocation8 + $0x58] sm:$0xff] }
 0x103   : > { %2099 = vmatmul.mubr.bf16.vlgmr.msra.gmra.mrb[0].mxu0 %v473_v23  ;;  %v480_v23 = vpack.c.bf16 %v456_v22, %v455_v21  ;;  %v558_v22 = vld [vmem:[%s3113_s25 + $0xa8] sm:$0xff] }
 0x104   : > { %2100 = vmatprep.mubr.bf16.mxu0 %v474_v57  ;;  %v579_v27 = vpack.c.bf16 %v558_v22, %v557_v20 }
 0x10b   : > { %2101 = vmatmul.mubr.bf16.gmra.mrb[4].mxu0 %v474_v57  ;;  %v470_v57 = vmul.f32 0.088388346, %v438_v55 }
 0x10c   : > { %2102 = vmatprep.mubr.bf16.mxu0 %v475_v62 }
 0x10d   : > { %v487_v58 = vpack.c.bf16 %v470_v57, %v469_v56 }
 0x113   : > { %2103 = vmatmul.mubr.bf16.gmra.mrb[8].mxu0 %v475_v62  ;;  %v472_v62 = vmul.f32 0.088388346, %v440_v60  ;;  %v560_v60 = vld [vmem:[%s3113_s25 + $0xb8] sm:$0xff] }
 0x114   : > { %2104 = vmatprep.mubr.bf16.mxu0 %v476_v3 }
 0x115   : > { %v488_v63 = vpack.c.bf16 %v472_v62, %v471_v61  ;;  %v580_v61 = vpack.c.bf16 %v560_v60, %v559_v59  ;;  %v543_v62 = vld [vmem:[%s3113_s25 + $0x30] sm:$0xff]  ;;  %v568_v60 = vld [vmem:[%s3113_s25 + $0xf8] sm:$0xff] }
 0x116   : > { %v567_v59 = vld [vmem:[%s3113_s25 + $0xf0] sm:$0xff] }
 0x11b   : > { %2105 = vmatmul.mubr.bf16.gmra.mrb[12].mxu0 %v476_v3  ;;  %v588_v3 = vld [vmem:[#allocation8 + $0x18] sm:$0xff] }
 0x11c   : > { %2106 = vmatprep.mubr.bf16.mxu0 %v477_v8 }
 0x123   : > { %2107 = vmatmul.mubr.bf16.gmra.mrb[16].mxu0 %v477_v8 }
 0x124   : > { %2108 = vmatprep.mubr.bf16.mxu0 %v478_v13 }
 0x12b   : > { %2109 = vmatmul.mubr.bf16.gmra.mrb[20].mxu0 %v478_v13  ;;  %v556_v13 = vld [vmem:[%s3113_s25 + $0x98] sm:$0xff] }
 0x12c   : > { %2110 = vmatprep.mubr.bf16.mxu0 %v479_v18  ;;  %v578_v17 = vpack.c.bf16 %v556_v13, %v555_v12  ;;  %v581_v12 = vpack.c.bf16 %v562_v7, %v561_v6  ;;  %v545_v13 = vld [vmem:[%s3113_s25 + $0x40] sm:$0xff] }
 0x12e   : > { %2132 = vmatprep.subr.bf16.mxu1 %v578_v17 }
 0x133   : > { %2111 = vmatmul.mubr.bf16.gmra.mrb[24].mxu0 %v479_v18  ;;  %v539_v18 = vld [vmem:[%s3113_s25 + $0x10] sm:$0xff] }
 0x134   : > { %2112 = vmatprep.mubr.bf16.mxu0 %v480_v23  ;;  %v570_v26 = vpack.c.bf16 %v540_v19, %v539_v18 }
 0x136   : > { %2133 = vmatpush3.bf16.msra.mxu1 %v570_v26  ;;  %v564_v26 = vld [vmem:[%s3113_s25 + $0xd8] sm:$0xff] }
 0x137   : > { %2134 = vmatprep.subr.bf16.mxu1 %v579_v27 }
 0x13b   : > { %2113 = vmatmul.mubr.bf16.gmra.mrb[28].mxu0 %v480_v23 }
 0x13c   : > { %2114 = vmatprep.mubr.bf16.mxu0 %v481_v28 }
 0x143   : > { %2115 = vmatmul.mubr.bf16.gmra.mrb[32].mxu0 %v481_v28  ;;  %v541_v28 = vld [vmem:[%s3113_s25 + $0x20] sm:$0xff] }
 0x144   : > { %2116 = vmatprep.mubr.bf16.mxu0 %v482_v33  ;;  %v571_v34 = vpack.c.bf16 %v542_v29, %v541_v28  ;;  %v547_v28 = vld [vmem:[%s3113_s25 + $0x50] sm:$0xff]  ;;  %v548_v29 = vld [vmem:[%s3113_s25 + $0x58] sm:$0xff] }
 0x146   : > { %2135 = vmatpush3.bf16.msra.mxu1 %v571_v34 }
 0x147   : > { %2136 = vmatprep.subr.bf16.mxu1 %v580_v61  ;;  %v584_v61 = vpack.c.bf16 %v568_v60, %v567_v59 }
 0x14b   : > { %2117 = vmatmul.mubr.bf16.gmra.mrb[36].mxu0 %v482_v33 }
 0x14c   : > { %2118 = vmatprep.mubr.bf16.mxu0 %v483_v38 }
 0x153   : > { %2119 = vmatmul.mubr.bf16.gmra.mrb[40].mxu0 %v483_v38  ;;  %v592_v38 = vld [vmem:[#allocation8 + $0x38] sm:$0xff] }
 0x154   : > { %2120 = vmatprep.mubr.bf16.mxu0 %v484_v43 }
 0x15b   : > { %2121 = vmatmul.mubr.bf16.gmra.mrb[44].mxu0 %v484_v43 }
 0x15c   : > { %2122 = vmatprep.mubr.bf16.mxu0 %v485_v48 }
 0x163   : > { %2123 = vmatmul.mubr.bf16.gmra.mrb[48].mxu0 %v485_v48  ;;  %v595_v48 = vld [vmem:[#allocation8 + $0x50] sm:$0xff] }
 0x164   : > { %2124 = vmatprep.mubr.bf16.mxu0 %v486_v53 }
 0x16b   : > { %2125 = vmatmul.mubr.bf16.gmra.mrb[52].mxu0 %v486_v53 }
 0x16c   : > { %2126 = vmatprep.mubr.bf16.mxu0 %v487_v58 }
 0x173   : > { %2127 = vmatmul.mubr.bf16.gmra.mrb[56].mxu0 %v487_v58 }
 0x174   : > { %2128 = vmatprep.mubr.bf16.mxu0 %v488_v63 }
 0x17b   : > { %2129 = vmatmul.mubr.bf16.gmra.mrb[60].mxu0 %v488_v63  ;;  %v544_v63 = vld [vmem:[%s3113_s25 + $0x38] sm:$0xff] }
 0x1d6   : > { %v683_v4 = vpop.f32.mrb[0].mxu0 }
 0x1d7   : > { %v3193_v8 = vadd.f32 %v683_v4, %v585_v0  ;;  %v685_v9 = vpop.f32.mrb[1].mxu0  ;;  %v597_v0 = vld [vmem:[#allocation8 + $0x60] sm:$0xff] }
 0x1d8   : > { %v3198_v14 = vadd.f32 %v685_v9, %v586_v1  ;;  %v687_v15 = vpop.f32.mrb[2].mxu0 }
 0x1d9   : > { %v689_v21 = vpop.f32.mrb[3].mxu0  ;;  %v3204_v23 = vadd.f32 %v687_v15, %v587_v2  ;;  %v572_v2 = vpack.c.bf16 %v544_v63, %v543_v62  ;;  %v546_v15 = vld [vmem:[%s3113_s25 + $0x48] sm:$0xff]  ;;  %v551_v62 = vld [vmem:[%s3113_s25 + $0x70] sm:$0xff]  ;;  %v552_v63 = vld [vmem:[%s3113_s25 + $0x78] sm:$0xff] }
 0x1da   : > { %v3206_v24 = vadd.f32 %v689_v21, %v588_v3  ;;  %v842_v25 = vmax.f32 %v3193_v8, %v3198_v14  ;;  %v598_v3 = vld [vmem:[#allocation8 + $0x68] sm:$0xff]  ;;  %v573_v18 = vpack.c.bf16 %v546_v15, %v545_v13 }
 0x1db   : > { %2137 = vmatpush3.bf16.msra.mxu1 %v572_v2  ;;  %v576_v2 = vpack.c.bf16 %v552_v63, %v551_v62  ;;  %v617_v63 = vld [vmem:[#allocation8 + $0x100] sm:$0xff] }
 0x1dc   : > { %843 = vmax.xlane.f32.xlu0 %v842_v25  ;;  %v845_v33 = vmax.f32 %v3204_v23, %v3206_v24  ;;  %2138 = vmatprep.subr.bf16.mxu1 %v581_v12  ;;  %v563_v25 = vld [vmem:[%s3113_s25 + $0xd0] sm:$0xff] }
 0x1dd   : > { %v582_v27 = vpack.c.bf16 %v564_v26, %v563_v25  ;;  %v610_v25 = vld [vmem:[#allocation8 + $0xc8] sm:$0xff] }
 0x1de   : > { %v693_v32 = vpop.f32.mrb[4].mxu0 }
 0x1df   : > { %v3214_v35 = vadd.f32 %v693_v32, %v589_v30  ;;  %v695_v36 = vpop.f32.mrb[5].mxu0  ;;  %2139 = vmatpush3.bf16.msra.mxu1 %v573_v18  ;;  %v601_v30 = vld [vmem:[#allocation8 + $0x80] sm:$0xff]  ;;  %v574_v32 = vpack.c.bf16 %v548_v29, %v547_v28 }
 0x1e0   : > { %v3216_v39 = vadd.f32 %v695_v36, %v590_v31  ;;  %v697_v40 = vpop.f32.mrb[6].mxu0  ;;  %846 = vmax.xlane.f32.xlu0 %v845_v33  ;;  %v602_v33 = vld [vmem:[#allocation8 + $0x88] sm:$0xff]  ;;  %2140 = vmatprep.subr.bf16.mxu1 %v582_v27  ;;  %v603_v36 = vld [vmem:[#allocation8 + $0x90] sm:$0xff] }
 0x1e1   : > { %v699_v41 = vpop.f32.mrb[7].mxu0  ;;  %v3218_v42 = vadd.f32 %v697_v40, %v591_v37  ;;  %v565_v37 = vld [vmem:[%s3113_s25 + $0xe0] sm:$0xff]  ;;  %v611_v27 = vld [vmem:[#allocation8 + $0xd0] sm:$0xff] }
 0x1e2   : > { %v3220_v43 = vadd.f32 %v699_v41, %v592_v38  ;;  %v848_v44 = vmax.f32 %v3214_v35, %v3216_v39  ;;  %v566_v38 = vld [vmem:[%s3113_s25 + $0xe8] sm:$0xff] }
 0x1e3   : > { %2141 = vmatpush3.bf16.msra.mxu1 %v574_v32 }
 0x1e4   : > { %849 = vmax.xlane.f32.xlu1 %v848_v44  ;;  %v851_v49 = vmax.f32 %v3218_v42, %v3220_v43  ;;  %v604_v44 = vld [vmem:[#allocation8 + $0x98] sm:$0xff] }
 0x1e6   : > { %v703_v47 = vpop.f32.mrb[8].mxu0 }
 0x1e7   : > { %v3226_v50 = vadd.f32 %v703_v47, %v593_v45  ;;  %v705_v51 = vpop.f32.mrb[9].mxu0  ;;  %v583_v45 = vpack.c.bf16 %v566_v38, %v565_v37  ;;  %v550_v47 = vld [vmem:[%s3113_s25 + $0x68] sm:$0xff]  ;;  %v613_v38 = vld [vmem:[#allocation8 + $0xe0] sm:$0xff] }
 0x1e8   : > { %v3228_v53 = vadd.f32 %v705_v51, %v594_v46  ;;  %v707_v54 = vpop.f32.mrb[10].mxu0  ;;  %852 = vmax.xlane.f32.xlu1 %v851_v49  ;;  %v549_v46 = vld [vmem:[%s3113_s25 + $0x60] sm:$0xff] }
 0x1e9   : > { %v3230_v55 = vadd.f32 %v707_v54, %v595_v48  ;;  %v709_v56 = vpop.f32.mrb[11].mxu0  ;;  %v575_v51 = vpack.c.bf16 %v550_v47, %v549_v46  ;;  %2142 = vmatprep.subr.bf16.mxu1 %v583_v45  ;;  %v615_v46 = vld [vmem:[#allocation8 + $0xf0] sm:$0xff] }
 0x1ea   : > { %v3232_v57 = vadd.f32 %v709_v56, %v596_v52  ;;  %v854_v58 = vmax.f32 %v3226_v50, %v3228_v53 }
 0x1eb   : > { %2143 = vmatpush3.bf16.msra.mxu1 %v575_v51  ;;  %v616_v51 = vld [vmem:[#allocation8 + $0xf8] sm:$0xff] }
 0x1ec   : > { %855 = vmax.xlane.f32.xlu0 %v854_v58  ;;  %v857_v1 = vmax.f32 %v3230_v55, %v3232_v57  ;;  %2144 = vmatprep.subr.bf16.mxu1 %v584_v61 }
 0x1ee   : > { %v713_v4 = vpop.f32.mrb[12].mxu0  ;;  %858 = vmax.xlane.f32.xlu1 %v857_v1 }
 0x1ef   : > { %v3244_v9 = vadd.f32 %v713_v4, %v597_v0  ;;  %v715_v10 = vpop.f32.mrb[13].mxu0  ;;  %v605_v0 = vld [vmem:[#allocation8 + $0xa0] sm:$0xff]  ;;  %2145 = vmatpush3.bf16.msra.mxu1 %v576_v2 }
 0x1f0   : > { %v3248_v16 = vadd.f32 %v715_v10, %v598_v3  ;;  %v717_v17 = vpop.f32.mrb[14].mxu0  ;;  %v606_v3 = vld [vmem:[#allocation8 + $0xa8] sm:$0xff]  ;;  %v608_v10 = vld [vmem:[#allocation8 + $0xb8] sm:$0xff] }
 0x1f1   : > { %v3250_v19 = vadd.f32 %v717_v17, %v599_v5  ;;  %v719_v20 = vpop.f32.mrb[15].mxu0  ;;  %v607_v5 = vld [vmem:[#allocation8 + $0xb0] sm:$0xff] }
 0x1f2   : > { %v3252_v21 = vadd.f32 %v719_v20, %v600_v11  ;;  %v860_v22 = vmax.f32 %v3244_v9, %v3248_v16  ;;  %v609_v20 = vld [vmem:[#allocation8 + $0xc0] sm:$0xff] }
 0x1f4   : > { %861 = vmax.xlane.f32.xlu0 %v860_v22  ;;  %v863_v31 = vmax.f32 %v3250_v19, %v3252_v21 }
 0x1f6   : > { %v723_v34 = vpop.f32.mrb[16].mxu0  ;;  %864 = vmax.xlane.f32.xlu1 %v863_v31 }
 0x1f7   : > { %v3264_v40 = vadd.f32 %v723_v34, %v601_v30  ;;  %v725_v41 = vpop.f32.mrb[17].mxu0  ;;  %v612_v30 = vld [vmem:[#allocation8 + $0xd8] sm:$0xff] }
 0x1f8   : > { %v3268_v48 = vadd.f32 %v725_v41, %v602_v33  ;;  %v727_v49 = vpop.f32.mrb[18].mxu0 }
 0x1f9   : > { %v3270_v52 = vadd.f32 %v727_v49, %v603_v36  ;;  %v729_v54 = vpop.f32.mrb[19].mxu0 }
 0x1fa   : > { %v3272_v56 = vadd.f32 %v729_v54, %v604_v44  ;;  %v866_v58 = vmax.f32 %v3264_v40, %v3268_v48  ;;  %v614_v44 = vld [vmem:[#allocation8 + $0xe8] sm:$0xff] }
 0x1fc   : > { %867 = vmax.xlane.f32.xlu0 %v866_v58  ;;  %v869_v1 = vmax.f32 %v3270_v52, %v3272_v56 }
 0x1fe   : > { %v733_v4 = vpop.f32.mrb[20].mxu0  ;;  %870 = vmax.xlane.f32.xlu1 %v869_v1  ;;  %v618_v1 = vld [vmem:[#allocation8 + $0x108] sm:$0xff] }
 0x1ff   : > { %v3282_v6 = vadd.f32 %v733_v4, %v605_v0  ;;  %v735_v7 = vpop.f32.mrb[21].mxu0 }
 0x200   : > { %v3284_v11 = vadd.f32 %v735_v7, %v606_v3  ;;  %v737_v12 = vpop.f32.mrb[22].mxu0  ;;  %v619_v3 = vld [vmem:[#allocation8 + $0x110] sm:$0xff]  ;;  %v620_v7 = vld [vmem:[#allocation8 + $0x118] sm:$0xff] }
 0x201   : > { %v3286_v13 = vadd.f32 %v737_v12, %v607_v5  ;;  %v739_v15 = vpop.f32.mrb[23].mxu0 }
 0x202   : > { %v3288_v17 = vadd.f32 %v739_v15, %v608_v10  ;;  %v872_v18 = vmax.f32 %v3282_v6, %v3284_v11 }
 0x204   : > { %873 = vmax.xlane.f32.xlu0 %v872_v18  ;;  %v875_v22 = vmax.f32 %v3286_v13, %v3288_v17 }
 0x206   : > { %v743_v26 = vpop.f32.mrb[24].mxu0  ;;  %876 = vmax.xlane.f32.xlu1 %v875_v22 }
 0x207   : > { %v3294_v28 = vadd.f32 %v743_v26, %v609_v20  ;;  %v745_v29 = vpop.f32.mrb[25].mxu0 }
 0x208   : > { %v3296_v31 = vadd.f32 %v745_v29, %v610_v25  ;;  %v747_v32 = vpop.f32.mrb[26].mxu0  ;;  %v621_v25 = vld [vmem:[#allocation8 + $0x120] sm:$0xff] }
 0x209   : > { %v3298_v33 = vadd.f32 %v747_v32, %v611_v27  ;;  %v749_v34 = vpop.f32.mrb[27].mxu0  ;;  %v622_v27 = vld [vmem:[#allocation8 + $0x128] sm:$0xff] }
 0x20a   : > { %v3300_v36 = vadd.f32 %v749_v34, %v612_v30  ;;  %v878_v37 = vmax.f32 %v3294_v28, %v3296_v31  ;;  %v623_v30 = vld [vmem:[#allocation8 + $0x130] sm:$0xff] }
 0x20c   : > { %879 = vmax.xlane.f32.xlu0 %v878_v37  ;;  %v881_v41 = vmax.f32 %v3298_v33, %v3300_v36  ;;  %v624_v37 = vld [vmem:[#allocation8 + $0x138] sm:$0xff] }
 0x20e   : > { %v753_v45 = vpop.f32.mrb[28].mxu0  ;;  %882 = vmax.xlane.f32.xlu1 %v881_v41 }
 0x20f   : > { %v3306_v47 = vadd.f32 %v753_v45, %v613_v38  ;;  %v755_v49 = vpop.f32.mrb[29].mxu0 }
 0x210   : > { %v3308_v54 = vadd.f32 %v755_v49, %v614_v44  ;;  %v757_v58 = vpop.f32.mrb[30].mxu0 }
 0x211   : > { %v3310_v59 = vadd.f32 %v757_v58, %v615_v46  ;;  %v759_v60 = vpop.f32.mrb[31].mxu0 }
 0x212   : > { %v3312_v61 = vadd.f32 %v759_v60, %v616_v51  ;;  %v884_v62 = vmax.f32 %v3306_v47, %v3308_v54  ;;  %v625_v51 = vld [vmem:[#allocation8 + $0x140] sm:$0xff]  ;;  %v626_v60 = vld [vmem:[#allocation8 + $0x148] sm:$0xff] }
 0x214   : > { %885 = vmax.xlane.f32.xlu0 %v884_v62  ;;  %v887_v0 = vmax.f32 %v3310_v59, %v3312_v61 }
 0x216   : > { %v763_v2 = vpop.f32.mrb[32].mxu0  ;;  %888 = vmax.xlane.f32.xlu1 %v887_v0 }
 0x217   : > { %v3318_v4 = vadd.f32 %v763_v2, %v617_v63  ;;  %v765_v5 = vpop.f32.mrb[33].mxu0  ;;  %v627_v63 = vld [vmem:[#allocation8 + $0x150] sm:$0xff]  ;;  %v628_v2 = vld [vmem:[#allocation8 + $0x158] sm:$0xff] }
 0x218   : > { %v3320_v10 = vadd.f32 %v765_v5, %v618_v1  ;;  %v767_v12 = vpop.f32.mrb[34].mxu0 }
 0x219   : > { %v3322_v15 = vadd.f32 %v767_v12, %v619_v3  ;;  %v769_v18 = vpop.f32.mrb[35].mxu0 }
 0x21a   : > { %v3324_v20 = vadd.f32 %v769_v18, %v620_v7  ;;  %v890_v22 = vmax.f32 %v3318_v4, %v3320_v10 }
 0x21c   : > { %891 = vmax.xlane.f32.xlu0 %v890_v22  ;;  %v893_v26 = vmax.f32 %v3322_v15, %v3324_v20 }
 0x21e   : > { %v773_v29 = vpop.f32.mrb[36].mxu0  ;;  %894 = vmax.xlane.f32.xlu1 %v893_v26 }
 0x21f   : > { %v3330_v32 = vadd.f32 %v773_v29, %v621_v25  ;;  %v775_v34 = vpop.f32.mrb[37].mxu0  ;;  %v629_v25 = vld [vmem:[#allocation8 + $0x160] sm:$0xff] }
 0x220   : > { %v3332_v38 = vadd.f32 %v775_v34, %v622_v27  ;;  %v777_v41 = vpop.f32.mrb[38].mxu0  ;;  %v630_v27 = vld [vmem:[#allocation8 + $0x168] sm:$0xff] }
 0x221   : > { %v3334_v44 = vadd.f32 %v777_v41, %v623_v30  ;;  %v779_v45 = vpop.f32.mrb[39].mxu0  ;;  %v631_v30 = vld [vmem:[#allocation8 + $0x170] sm:$0xff]  ;;  %v632_v41 = vld [vmem:[#allocation8 + $0x178] sm:$0xff] }
 0x222   : > { %v3336_v46 = vadd.f32 %v779_v45, %v624_v37  ;;  %v896_v49 = vmax.f32 %v3330_v32, %v3332_v38 }
 0x224   : > { %897 = vmax.xlane.f32.xlu0 %v896_v49  ;;  %v899_v58 = vmax.f32 %v3334_v44, %v3336_v46 }
 0x226   : > { %v783_v62 = vpop.f32.mrb[40].mxu0  ;;  %900 = vmax.xlane.f32.xlu1 %v899_v58 }
 0x227   : > { %v3342_v0 = vadd.f32 %v783_v62, %v625_v51  ;;  %v785_v1 = vpop.f32.mrb[41].mxu0 }
 0x228   : > { %v3344_v3 = vadd.f32 %v785_v1, %v626_v60  ;;  %v787_v5 = vpop.f32.mrb[42].mxu0 }
 0x229   : > { %v3346_v7 = vadd.f32 %v787_v5, %v627_v63  ;;  %v789_v12 = vpop.f32.mrb[43].mxu0  ;;  %v633_v63 = vld [vmem:[#allocation8 + $0x180] sm:$0xff] }
 0x22a   : > { %v3348_v18 = vadd.f32 %v789_v12, %v628_v2  ;;  %v902_v22 = vmax.f32 %v3342_v0, %v3344_v3  ;;  %v634_v2 = vld [vmem:[#allocation8 + $0x188] sm:$0xff]  ;;  %v635_v12 = vld [vmem:[#allocation8 + $0x190] sm:$0xff] }
 0x22c   : > { %903 = vmax.xlane.f32.xlu0 %v902_v22  ;;  %v905_v26 = vmax.f32 %v3346_v7, %v3348_v18 }
 0x22e   : > { %v793_v29 = vpop.f32.mrb[44].mxu0  ;;  %906 = vmax.xlane.f32.xlu1 %v905_v26  ;;  %v636_v26 = vld [vmem:[#allocation8 + $0x198] sm:$0xff] }
 0x22f   : > { %v3354_v34 = vadd.f32 %v793_v29, %v629_v25  ;;  %v795_v37 = vpop.f32.mrb[45].mxu0 }
 0x230   : > { %v3356_v45 = vadd.f32 %v795_v37, %v630_v27  ;;  %v797_v49 = vpop.f32.mrb[46].mxu0 }
 0x231   : > { %v3358_v51 = vadd.f32 %v797_v49, %v631_v30  ;;  %v799_v58 = vpop.f32.mrb[47].mxu0 }
 0x232   : > { %v3360_v60 = vadd.f32 %v799_v58, %v632_v41  ;;  %v908_v62 = vmax.f32 %v3354_v34, %v3356_v45  ;;  %v637_v58 = vld [vmem:[#allocation8 + $0x1a0] sm:$0xff] }
 0x234   : > { %3713 = vst [vmem:[#allocation21_spill] sm:$0xff] %v3360_v60  ;;  %909 = vmax.xlane.f32.xlu0 %v908_v62  ;;  %v911_v1 = vmax.f32 %v3358_v51, %v3360_v60 }
 0x236   : > { %v803_v5 = vpop.f32.mrb[48].mxu0  ;;  %912 = vmax.xlane.f32.xlu1 %v911_v1 }
 0x237   : > { %v3366_v22 = vadd.f32 %v803_v5, %v633_v63  ;;  %v805_v25 = vpop.f32.mrb[49].mxu0  ;;  %v638_v63 = vld [vmem:[#allocation8 + $0x1a8] sm:$0xff]  ;;  %v639_v5 = vld [vmem:[#allocation8 + $0x1b0] sm:$0xff] }
 0x238   : > { %v3368_v27 = vadd.f32 %v805_v25, %v634_v2  ;;  %v807_v29 = vpop.f32.mrb[50].mxu0 }
 0x239   : > { %3714 = vst [vmem:[#allocation22_spill] sm:$0xff] %v3366_v22  ;;  %v3370_v30 = vadd.f32 %v807_v29, %v635_v12  ;;  %v809_v37 = vpop.f32.mrb[51].mxu0  ;;  %v640_v12 = vld [vmem:[#allocation8 + $0x1b8] sm:$0xff] }
 0x23a   : > { %3715 = vst [vmem:[#allocation23_spill] sm:$0xff] %v3368_v27  ;;  %v3372_v41 = vadd.f32 %v809_v37, %v636_v26  ;;  %v914_v49 = vmax.f32 %v3366_v22, %v3368_v27 }
 0x23b   : > { %3716 = vst [vmem:[#allocation24_spill] sm:$0xff] %v3370_v30 }
 0x23c   : > { %3717 = vst [vmem:[#allocation25_spill] sm:$0xff] %v3372_v41  ;;  %915 = vmax.xlane.f32.xlu0 %v914_v49  ;;  %v917_v62 = vmax.f32 %v3370_v30, %v3372_v41  ;;  %v641_v41 = vld [vmem:[#allocation8 + $0x1c0] sm:$0xff]  ;;  %v643_v30 = vld [vmem:[#allocation8 + $0x1d0] sm:$0xff] }
 0x23e   : > { %v813_v1 = vpop.f32.mrb[52].mxu0  ;;  %918 = vmax.xlane.f32.xlu1 %v917_v62 }
 0x23f   : > { %v3378_v2 = vadd.f32 %v813_v1, %v637_v58  ;;  %v815_v25 = vpop.f32.mrb[53].mxu0  ;;  %v642_v58 = vld [vmem:[#allocation8 + $0x1c8] sm:$0xff] }
 0x240   : > { %v3380_v29 = vadd.f32 %v815_v25, %v638_v63  ;;  %v817_v26 = vpop.f32.mrb[54].mxu0 }
 0x241   : > { %3718 = vst [vmem:[#allocation26_spill] sm:$0xff] %v3378_v2  ;;  %v3382_v37 = vadd.f32 %v817_v26, %v639_v5  ;;  %v819_v60 = vpop.f32.mrb[55].mxu0  ;;  %v644_v5 = vld [vmem:[#allocation8 + $0x1d8] sm:$0xff] }
 0x242   : > { %3719 = vst [vmem:[#allocation27_spill] sm:$0xff] %v3380_v29  ;;  %v3384_v27 = vadd.f32 %v819_v60, %v640_v12  ;;  %v920_v49 = vmax.f32 %v3378_v2, %v3380_v29 }
 0x243   : > { %3720 = vst [vmem:[#allocation28_spill] sm:$0xff] %v3382_v37 }
 0x244   : > { %3721 = vst [vmem:[#allocation29_spill] sm:$0xff] %v3384_v27  ;;  %921 = vmax.xlane.f32.xlu0 %v920_v49  ;;  %v923_v62 = vmax.f32 %v3382_v37, %v3384_v27  ;;  %v645_v27 = vld [vmem:[#allocation8 + $0x1e0] sm:$0xff]  ;;  %v647_v37 = vld [vmem:[#allocation8 + $0x1f0] sm:$0xff] }
 0x246   : > { %v823_v1 = vpop.f32.mrb[56].mxu0  ;;  %924 = vmax.xlane.f32.xlu1 %v923_v62 }
 0x247   : > { %v3390_v63 = vadd.f32 %v823_v1, %v641_v41  ;;  %v825_v25 = vpop.f32.mrb[57].mxu0  ;;  %v646_v41 = vld [vmem:[#allocation8 + $0x1e8] sm:$0xff] }
 0x248   : > { %v3392_v26 = vadd.f32 %v825_v25, %v642_v58  ;;  %v827_v60 = vpop.f32.mrb[58].mxu0 }
 0x249   : > { %v3394_v12 = vadd.f32 %v827_v60, %v643_v30  ;;  %v829_v22 = vpop.f32.mrb[59].mxu0  ;;  %v648_v30 = vld [vmem:[#allocation8 + $0x1f8] sm:$0xff] }
 0x24a   : > { %3722 = vst [vmem:[#allocation30_spill] sm:$0xff] %v3392_v26  ;;  %v3396_v29 = vadd.f32 %v829_v22, %v644_v5  ;;  %v926_v49 = vmax.f32 %v3390_v63, %v3392_v26 }
 0x24c   : > { %3723 = vst [vmem:[#allocation31_spill] sm:$0xff] %v3396_v29  ;;  %927 = vmax.xlane.f32.xlu0 %v926_v49  ;;  %v929_v62 = vmax.f32 %v3394_v12, %v3396_v29 }
 0x24e   : > { %v833_v1 = vpop.f32.mrb[60].mxu0  ;;  %930 = vmax.xlane.f32.xlu1 %v929_v62 }
 0x24f   : > { %v3402_v58 = vadd.f32 %v833_v1, %v645_v27  ;;  %v835_v25 = vpop.f32.mrb[61].mxu0 }
 0x250   : > { %v3404_v60 = vadd.f32 %v835_v25, %v646_v41  ;;  %v837_v22 = vpop.f32.mrb[62].mxu0 }
 0x251   : > { %v3406_v5 = vadd.f32 %v837_v22, %v647_v37  ;;  %v839_v2 = vpop.f32.mrb[63].mxu0 }
 0x252   : > { %v3408_v26 = vadd.f32 %v839_v2, %v648_v30  ;;  %v932_v49 = vmax.f32 %v3402_v58, %v3404_v60 }
 0x253   : > { %3724 = vst [vmem:[#allocation32_spill] sm:$0xff] %v3406_v5 }
 0x254   : > { %3725 = vst [vmem:[#allocation33_spill] sm:$0xff] %v3408_v26  ;;  %933 = vmax.xlane.f32.xlu0 %v932_v49  ;;  %v935_v62 = vmax.f32 %v3406_v5, %v3408_v26 }
 0x256   : > { %936 = vmax.xlane.f32.xlu1 %v935_v62 }
 0x269   : > { %v844_v27 = vpop.xlane.xlu0 %843 }
 0x26a   : > { %v938_v1 = vsub.f32 %v3193_v8, %v844_v27  ;;  %v939_v41 = vsub.f32 %v3198_v14, %v844_v27 }
 0x26c   : > { %v1002_v25 = vmul.f32 1.442695, %v938_v1  ;;  %v1004_v29 = vmul.f32 1.442695, %v939_v41  ;;  %v1293_v41 = vld [vmem:[%s3120_s26 + $0x18] sm:$0xff] }
 0x26d   : > { %v847_v37 = vpop.xlane.xlu0 %846  ;;  %vm1357_vm1 = vcmp.ge.s32.totalorder %v1293_v41, 1288490189 }
 0x26e   : > { %2336 = vpow2.f32 %v1002_v25  ;;  %v940_v2 = vsub.f32 %v3204_v23, %v847_v37  ;;  %v941_v30 = vsub.f32 %v3206_v24, %v847_v37 }
 0x26f   : > { %2338 = vpow2.f32 %v1004_v29  ;;  %v1291_v29 = vld [vmem:[%s3120_s26 + $0x8] sm:$0xff] }
 0x270   : > { %v1006_v22 = vmul.f32 1.442695, %v940_v2  ;;  %v1008_v49 = vmul.f32 1.442695, %v941_v30  ;;  %v1290_v30 = vld [vmem:[%s3120_s26] sm:$0xff] }
 0x271   : > { %v850_v26 = vpop.xlane.xlu1 %849  ;;  %vm1355_vm0 = vcmp.ge.s32.totalorder %v1291_v29, 1288490189  ;;  %vm1354_vm2 = vcmp.ge.s32.totalorder %v1290_v30, 1288490189 }
 0x272   : > { %2340 = vpow2.f32 %v1006_v22  ;;  %v942_v8 = vsub.f32 %v3214_v35, %v850_v26  ;;  %v943_v14 = vsub.f32 %v3216_v39, %v850_v26  ;;  %v1292_v35 = vld [vmem:[%s3120_s26 + $0x10] sm:$0xff]  ;;  %vm1976_vm4 = vmpackc.low %vm1357_vm1, %vm1355_vm0 }
 0x273   : > { %2342 = vpow2.f32 %v1008_v49  ;;  %vm1356_vm3 = vcmp.ge.s32.totalorder %v1292_v35, 1288490189  ;;  %v1296_v35 = vld [vmem:[%s3120_s26 + $0x30] sm:$0xff] }
 0x274   : > { %v1010_v62 = vmul.f32 1.442695, %v942_v8  ;;  %v1012_v27 = vmul.f32 1.442695, %v943_v14  ;;  %vm1979_vm5 = vmpackc.low %vm1356_vm3, %vm1354_vm2  ;;  %vm1360_vm9 = vcmp.ge.s32.totalorder %v1296_v35, 1288490189 }
 0x275   : > { %v853_v1 = vpop.xlane.xlu1 %852 }
 0x276   : > { %2344 = vpow2.f32 %v1010_v62  ;;  %v944_v23 = vsub.f32 %v3218_v42, %v853_v1  ;;  %v945_v24 = vsub.f32 %v3220_v43, %v853_v1 }
 0x277   : > { %2346 = vpow2.f32 %v1012_v27 }
 0x278   : > { %v2337_v25 = vpop.eup %2336  ;;  %v1014_v37 = vmul.f32 1.442695, %v944_v23  ;;  %v1016_v2 = vmul.f32 1.442695, %v945_v24  ;;  %v1295_v24 = vld [vmem:[%s3120_s26 + $0x28] sm:$0xff] }
 0x279   : > { %v2339_v22 = vpop.eup %2338  ;;  %v856_v5 = vpop.xlane.xlu0 %855  ;;  %vm1359_vm6 = vcmp.ge.s32.totalorder %v1295_v24, 1288490189 }
 0x27a   : > { %2348 = vpow2.f32 %v1014_v37  ;;  %v946_v39 = vsub.f32 %v3226_v50, %v856_v5  ;;  %v947_v26 = vsub.f32 %v3228_v53, %v856_v5  ;;  %v1130_v42 = vadd.f32 %v2339_v22, %v2337_v25 }
 0x27b   : > { %2350 = vpow2.f32 %v1016_v2  ;;  %v859_v43 = vpop.xlane.xlu1 %858 }
 0x27c   : > { %v2341_v49 = vpop.eup %2340  ;;  %v1018_v8 = vmul.f32 1.442695, %v946_v39  ;;  %v1020_v14 = vmul.f32 1.442695, %v947_v26  ;;  %v948_v62 = vsub.f32 %v3230_v55, %v859_v43  ;;  %v949_v27 = vsub.f32 %v3232_v57, %v859_v43  ;;  %1131 = vadd.xlane.f32.xlu0 %v1130_v42  ;;  %v1297_v55 = vld [vmem:[%s3120_s26 + $0x38] sm:$0xff]  ;;  %v1294_v57 = vld [vmem:[%s3120_s26 + $0x20] sm:$0xff] }
 0x27d   : > { %v2343_v1 = vpop.eup %2342  ;;  %v1980_v50 = vpack.c.bf16 %v2341_v49, %v2337_v25  ;;  %vm1361_vm7 = vcmp.ge.s32.totalorder %v1297_v55, 1288490189  ;;  %vm1358_vm8 = vcmp.ge.s32.totalorder %v1294_v57, 1288490189 }
 0x27e   : > { %2352 = vpow2.f32 %v1018_v8  ;;  %v1022_v53 = vmul.f32 1.442695, %v948_v62  ;;  %v1024_v5 = vmul.f32 1.442695, %v949_v27  ;;  %v1977_v23 = vpack.c.bf16 %v2343_v1, %v2339_v22  ;;  %vm1982_vm10 = vmpackc.low %vm1361_vm7, %vm1359_vm6 }
 0x27f   : > { %2354 = vpow2.f32 %v1020_v14  ;;  %v1133_v37 = vadd.f32 %v2343_v1, %v2341_v49  ;;  %vm1985_vm11 = vmpackc.low %vm1360_vm9, %vm1358_vm8  ;;  %v1299_v1 = vld [vmem:[%s3120_s26 + $0x48] sm:$0xff] }
 0x280   : > { %v2345_v2 = vpop.eup %2344  ;;  %2356 = vpow2.f32 %v1022_v53  ;;  %1978 = vmatprep.mubr.msk.bf16.mxu1 %vm1976_vm4, %v1977_v23  ;;  %vm1363_vm12 = vcmp.ge.s32.totalorder %v1299_v1, 1288490189 }
 0x281   : > { %v2347_v29 = vpop.eup %2346  ;;  %2358 = vpow2.f32 %v1024_v5  ;;  %1134 = vadd.xlane.f32.xlu1 %v1133_v37  ;;  %1981 = vmatmul.mubr.msk.bf16.vlgmr.msra.gmra.mrb[0].mxu1 %vm1979_vm5, %v1980_v50  ;;  %v862_v41 = vpop.xlane.xlu0 %861  ;;  %v1301_v50 = vld [vmem:[%s3120_s26 + $0x58] sm:$0xff]  ;;  %v1300_v5 = vld [vmem:[%s3120_s26 + $0x50] sm:$0xff] }
 0x282   : > { %v950_v25 = vsub.f32 %v3244_v9, %v862_v41  ;;  %v951_v30 = vsub.f32 %v3248_v16, %v862_v41  ;;  %v1136_v22 = vadd.f32 %v2347_v29, %v2345_v2  ;;  %vm1365_vm13 = vcmp.ge.s32.totalorder %v1301_v50, 1288490189 }
 0x283   : > { %v865_v39 = vpop.xlane.xlu1 %864  ;;  %vm1364_vm15 = vcmp.ge.s32.totalorder %v1300_v5, 1288490189  ;;  %vm1988_vm0 = vmpackc.low %vm1365_vm13, %vm1363_vm12 }
 0x284   : > { %v2349_v26 = vpop.eup %2348  ;;  %v1026_v42 = vmul.f32 1.442695, %v950_v25  ;;  %v1028_v43 = vmul.f32 1.442695, %v951_v30  ;;  %v952_v49 = vsub.f32 %v3250_v19, %v865_v39  ;;  %v953_v8 = vsub.f32 %v3252_v21, %v865_v39  ;;  %1137 = vadd.xlane.f32.xlu0 %v1136_v22  ;;  %v1298_v21 = vld [vmem:[%s3120_s26 + $0x40] sm:$0xff] }
 0x285   : > { %v2351_v14 = vpop.eup %2350  ;;  %v1986_v9 = vpack.c.bf16 %v2349_v26, %v2345_v2  ;;  %vm1362_vm14 = vcmp.ge.s32.totalorder %v1298_v21, 1288490189 }
 0x286   : > { %2360 = vpow2.f32 %v1026_v42  ;;  %v1030_v16 = vmul.f32 1.442695, %v952_v49  ;;  %v1032_v62 = vmul.f32 1.442695, %v953_v8  ;;  %v1983_v27 = vpack.c.bf16 %v2351_v14, %v2347_v29  ;;  %vm1991_vm1 = vmpackc.low %vm1364_vm15, %vm1362_vm14  ;;  %v1303_v42 = vld [vmem:[%s3120_s26 + $0x68] sm:$0xff]  ;;  %v1304_v8 = vld [vmem:[%s3120_s26 + $0x70] sm:$0xff] }
 0x287   : > { %2362 = vpow2.f32 %v1028_v43  ;;  %v1139_v53 = vadd.f32 %v2351_v14, %v2349_v26  ;;  %v1305_v43 = vld [vmem:[%s3120_s26 + $0x78] sm:$0xff]  ;;  %vm1367_vm2 = vcmp.ge.s32.totalorder %v1303_v42, 1288490189  ;;  %vm1368_vm5 = vcmp.ge.s32.totalorder %v1304_v8, 1288490189  ;;  %v1311_v8 = vld [vmem:[%s3120_s26 + $0xa8] sm:$0xff] }
 0x288   : > { %v2353_v19 = vpop.eup %2352  ;;  %2364 = vpow2.f32 %v1030_v16  ;;  %1984 = vmatprep.mubr.msk.bf16.mxu1 %vm1982_vm10, %v1983_v27  ;;  %vm1369_vm3 = vcmp.ge.s32.totalorder %v1305_v43, 1288490189  ;;  %vm1375_vm14 = vcmp.ge.s32.totalorder %v1311_v8, 1288490189  ;;  %v1320_v8 = vld [vmem:[%s3120_s26 + $0xf0] sm:$0xff] }
 0x289   : > { %v2355_v23 = vpop.eup %2354  ;;  %2366 = vpow2.f32 %v1032_v62  ;;  %1140 = vadd.xlane.f32.xlu1 %v1139_v53  ;;  %1987 = vmatmul.mubr.msk.bf16.gmra.mrb[4].mxu1 %vm1985_vm11, %v1986_v9  ;;  %v868_v24 = vpop.xlane.xlu0 %867  ;;  %vm1994_vm6 = vmpackc.low %vm1369_vm3, %vm1367_vm2 }
 0x28a   : > { %v2357_v37 = vpop.eup %2356  ;;  %v954_v55 = vsub.f32 %v3264_v40, %v868_v24  ;;  %v955_v2 = vsub.f32 %v3268_v48, %v868_v24  ;;  %v1142_v57 = vadd.f32 %v2355_v23, %v2353_v19 }
 0x28b   : > { %v2359_v35 = vpop.eup %2358  ;;  %v871_v29 = vpop.xlane.xlu1 %870  ;;  %v1992_v49 = vpack.c.bf16 %v2357_v37, %v2353_v19 }
 0x28c   : > { %v1034_v41 = vmul.f32 1.442695, %v954_v55  ;;  %v1036_v25 = vmul.f32 1.442695, %v955_v2  ;;  %v956_v30 = vsub.f32 %v3270_v52, %v871_v29  ;;  %v957_v22 = vsub.f32 %v3272_v56, %v871_v29  ;;  %1143 = vadd.xlane.f32.xlu0 %v1142_v57  ;;  %v1302_v56 = vld [vmem:[%s3120_s26 + $0x60] sm:$0xff]  ;;  %v1307_v55 = vld [vmem:[%s3120_s26 + $0x88] sm:$0xff] }
 0x28d   : > { %v1145_v40 = vadd.f32 %v2359_v35, %v2357_v37  ;;  %v1989_v48 = vpack.c.bf16 %v2359_v35, %v2355_v23  ;;  %vm1366_vm4 = vcmp.ge.s32.totalorder %v1302_v56, 1288490189  ;;  %v1309_v2 = vld [vmem:[%s3120_s26 + $0x98] sm:$0xff]  ;;  %v1308_v35 = vld [vmem:[%s3120_s26 + $0x90] sm:$0xff]  ;;  %vm1371_vm8 = vcmp.ge.s32.totalorder %v1307_v55, 1288490189 }
 0x28e   : > { %2368 = vpow2.f32 %v1034_v41  ;;  %v1038_v39 = vmul.f32 1.442695, %v956_v30  ;;  %v1040_v26 = vmul.f32 1.442695, %v957_v22  ;;  %vm1997_vm7 = vmpackc.low %vm1368_vm5, %vm1366_vm4  ;;  %vm1373_vm9 = vcmp.ge.s32.totalorder %v1309_v2, 1288490189 }
 0x28f   : > { %2370 = vpow2.f32 %v1036_v25  ;;  %1146 = vadd.xlane.f32.xlu1 %v1145_v40  ;;  %1990 = vmatprep.mubr.msk.bf16.mxu1 %vm1988_vm0, %v1989_v48  ;;  %vm1372_vm11 = vcmp.ge.s32.totalorder %v1308_v35, 1288490189  ;;  %vm2000_vm12 = vmpackc.low %vm1373_vm9, %vm1371_vm8  ;;  %v1315_v2 = vld [vmem:[%s3120_s26 + $0xc8] sm:$0xff] }
 0x290   : > { %v2361_v52 = vpop.eup %2360  ;;  %2372 = vpow2.f32 %v1038_v39  ;;  %vm1379_vm4 = vcmp.ge.s32.totalorder %v1315_v2, 1288490189 }
 0x291   : > { %v2363_v14 = vpop.eup %2362  ;;  %2374 = vpow2.f32 %v1040_v26  ;;  %1993 = vmatmul.mubr.msk.bf16.gmra.mrb[8].mxu1 %vm1991_vm1, %v1992_v49  ;;  %v874_v9 = vpop.xlane.xlu0 %873 }
 0x292   : > { %v2365_v16 = vpop.eup %2364  ;;  %v958_v62 = vsub.f32 %v3282_v6, %v874_v9  ;;  %v959_v27 = vsub.f32 %v3284_v11, %v874_v9  ;;  %v1148_v1 = vadd.f32 %v2363_v14, %v2361_v52 }
 0x293   : > { %v2367_v50 = vpop.eup %2366  ;;  %v877_v53 = vpop.xlane.xlu1 %876  ;;  %v1998_v57 = vpack.c.bf16 %v2365_v16, %v2361_v52 }
 0x294   : > { %v1042_v19 = vmul.f32 1.442695, %v958_v62  ;;  %v1044_v21 = vmul.f32 1.442695, %v959_v27  ;;  %v960_v5 = vsub.f32 %v3286_v13, %v877_v53  ;;  %v961_v23 = vsub.f32 %v3288_v17, %v877_v53  ;;  %1149 = vadd.xlane.f32.xlu0 %v1148_v1  ;;  %v1306_v17 = vld [vmem:[%s3120_s26 + $0x80] sm:$0xff] }
 0x295   : > { %v1151_v6 = vadd.f32 %v2367_v50, %v2365_v16  ;;  %v1995_v11 = vpack.c.bf16 %v2367_v50, %v2363_v14  ;;  %vm1370_vm10 = vcmp.ge.s32.totalorder %v1306_v17, 1288490189  ;;  %v1313_v14 = vld [vmem:[%s3120_s26 + $0xb8] sm:$0xff]  ;;  %v1312_v16 = vld [vmem:[%s3120_s26 + $0xb0] sm:$0xff] }
 0x296   : > { %2376 = vpow2.f32 %v1042_v19  ;;  %v1046_v24 = vmul.f32 1.442695, %v960_v5  ;;  %v1048_v37 = vmul.f32 1.442695, %v961_v23  ;;  %vm2003_vm13 = vmpackc.low %vm1372_vm11, %vm1370_vm10  ;;  %vm1377_vm15 = vcmp.ge.s32.totalorder %v1313_v14, 1288490189 }
 0x297   : > { %2378 = vpow2.f32 %v1044_v21  ;;  %1152 = vadd.xlane.f32.xlu1 %v1151_v6  ;;  %1996 = vmatprep.mubr.msk.bf16.mxu1 %vm1994_vm6, %v1995_v11  ;;  %vm1376_vm1 = vcmp.ge.s32.totalorder %v1312_v16, 1288490189  ;;  %vm2006_vm2 = vmpackc.low %vm1377_vm15, %vm1375_vm14  ;;  %v1316_v17 = vld [vmem:[%s3120_s26 + $0xd0] sm:$0xff] }
 0x298   : > { %v2369_v13 = vpop.eup %2368  ;;  %2380 = vpow2.f32 %v1046_v24 }
 0x299   : > { %v2371_v29 = vpop.eup %2370  ;;  %2382 = vpow2.f32 %v1048_v37  ;;  %1999 = vmatmul.mubr.msk.bf16.gmra.mrb[12].mxu1 %vm1997_vm7, %v1998_v57  ;;  %v880_v41 = vpop.xlane.xlu0 %879  ;;  %v1317_v57 = vld [vmem:[%s3120_s26 + $0xd8] sm:$0xff]  ;;  %vm1380_vm7 = vcmp.ge.s32.totalorder %v1316_v17, 1288490189 }
 0x29a   : > { %v2373_v25 = vpop.eup %2372  ;;  %v962_v30 = vsub.f32 %v3294_v28, %v880_v41  ;;  %v963_v22 = vsub.f32 %v3296_v31, %v880_v41  ;;  %v1154_v40 = vadd.f32 %v2371_v29, %v2369_v13  ;;  %vm1381_vm5 = vcmp.ge.s32.totalorder %v1317_v57, 1288490189 }
 0x29b   : > { %v2375_v48 = vpop.eup %2374  ;;  %v883_v39 = vpop.xlane.xlu1 %882  ;;  %v2004_v9 = vpack.c.bf16 %v2373_v25, %v2369_v13  ;;  %vm2012_vm8 = vmpackc.low %vm1381_vm5, %vm1379_vm4 }
 0x29c   : > { %v1050_v26 = vmul.f32 1.442695, %v962_v30  ;;  %v1052_v42 = vmul.f32 1.442695, %v963_v22  ;;  %v964_v43 = vsub.f32 %v3298_v33, %v883_v39  ;;  %v965_v49 = vsub.f32 %v3300_v36, %v883_v39  ;;  %1155 = vadd.xlane.f32.xlu0 %v1154_v40  ;;  %v1310_v36 = vld [vmem:[%s3120_s26 + $0xa0] sm:$0xff] }
 0x29d   : > { %v1157_v28 = vadd.f32 %v2375_v48, %v2373_v25  ;;  %v2001_v31 = vpack.c.bf16 %v2375_v48, %v2371_v29  ;;  %vm1374_vm0 = vcmp.ge.s32.totalorder %v1310_v36, 1288490189 }
 0x29e   : > { %2384 = vpow2.f32 %v1050_v26  ;;  %v1054_v52 = vmul.f32 1.442695, %v964_v43  ;;  %v1056_v56 = vmul.f32 1.442695, %v965_v49  ;;  %vm2009_vm3 = vmpackc.low %vm1376_vm1, %vm1374_vm0 }
 0x29f   : > { %2386 = vpow2.f32 %v1052_v42  ;;  %1158 = vadd.xlane.f32.xlu1 %v1157_v28  ;;  %2002 = vmatprep.mubr.msk.bf16.mxu1 %vm2000_vm12, %v2001_v31  ;;  %v1319_v31 = vld [vmem:[%s3120_s26 + $0xe8] sm:$0xff] }
 0x2a0   : > { %v2377_v33 = vpop.eup %2376  ;;  %2388 = vpow2.f32 %v1054_v52  ;;  %v1321_v52 = vld [vmem:[%s3120_s26 + $0xf8] sm:$0xff]  ;;  %vm1383_vm10 = vcmp.ge.s32.totalorder %v1319_v31, 1288490189 }
 0x2a1   : > { %v2379_v62 = vpop.eup %2378  ;;  %2390 = vpow2.f32 %v1056_v56  ;;  %2005 = vmatmul.mubr.msk.bf16.gmra.mrb[16].mxu1 %vm2003_vm13, %v2004_v9  ;;  %v886_v27 = vpop.xlane.xlu0 %885  ;;  %vm1385_vm11 = vcmp.ge.s32.totalorder %v1321_v52, 1288490189  ;;  %vm1384_vm13 = vcmp.ge.s32.totalorder %v1320_v8, 1288490189 }
 0x2a2   : > { %v2381_v1 = vpop.eup %2380  ;;  %v966_v50 = vsub.f32 %v3306_v47, %v886_v27  ;;  %v967_v53 = vsub.f32 %v3308_v54, %v886_v27  ;;  %v1160_v19 = vadd.f32 %v2379_v62, %v2377_v33  ;;  %vm2018_vm14 = vmpackc.low %vm1385_vm11, %vm1383_vm10 }
 0x2a3   : > { %v2383_v21 = vpop.eup %2382  ;;  %v889_v5 = vpop.xlane.xlu1 %888  ;;  %v2010_v13 = vpack.c.bf16 %v2381_v1, %v2377_v33 }
 0x2a4   : > { %v1058_v23 = vmul.f32 1.442695, %v966_v50  ;;  %v1060_v6 = vmul.f32 1.442695, %v967_v53  ;;  %v968_v11 = vsub.f32 %v3310_v59, %v889_v5  ;;  %v969_v24 = vsub.f32 %v3312_v61, %v889_v5  ;;  %1161 = vadd.xlane.f32.xlu0 %v1160_v19  ;;  %v1314_v61 = vld [vmem:[%s3120_s26 + $0xc0] sm:$0xff] }
 0x2a5   : > { %v1163_v47 = vadd.f32 %v2383_v21, %v2381_v1  ;;  %v2007_v54 = vpack.c.bf16 %v2383_v21, %v2379_v62  ;;  %vm1378_vm6 = vcmp.ge.s32.totalorder %v1314_v61, 1288490189 }
 0x2a6   : > { %2392 = vpow2.f32 %v1058_v23  ;;  %v1062_v37 = vmul.f32 1.442695, %v968_v11  ;;  %v1064_v55 = vmul.f32 1.442695, %v969_v24  ;;  %vm2015_vm9 = vmpackc.low %vm1380_vm7, %vm1378_vm6  ;;  %v1325_v11 = vld [vmem:[%s3120_s26 + $0x118] sm:$0xff] }
 0x2a7   : > { %2394 = vpow2.f32 %v1060_v6  ;;  %1164 = vadd.xlane.f32.xlu1 %v1163_v47  ;;  %2008 = vmatprep.mubr.msk.bf16.mxu1 %vm2006_vm2, %v2007_v54  ;;  %v1323_v6 = vld [vmem:[%s3120_s26 + $0x108] sm:$0xff]  ;;  %v1324_v47 = vld [vmem:[%s3120_s26 + $0x110] sm:$0xff]  ;;  %vm1389_vm1 = vcmp.ge.s32.totalorder %v1325_v11, 1288490189 }
 0x2a8   : > { %v2385_v59 = vpop.eup %2384  ;;  %2396 = vpow2.f32 %v1062_v37  ;;  %vm1387_vm0 = vcmp.ge.s32.totalorder %v1323_v6, 1288490189 }
 0x2a9   : > { %v2387_v35 = vpop.eup %2386  ;;  %2398 = vpow2.f32 %v1064_v55  ;;  %2011 = vmatmul.mubr.msk.bf16.gmra.mrb[20].mxu1 %vm2009_vm3, %v2010_v13  ;;  %v892_v29 = vpop.xlane.xlu0 %891  ;;  %vm1388_vm3 = vcmp.ge.s32.totalorder %v1324_v47, 1288490189  ;;  %vm2024_vm4 = vmpackc.low %vm1389_vm1, %vm1387_vm0  ;;  %v3730_v47 = vld [vmem:[#allocation25_spill] sm:$0xff] }
 0x2aa   : > { %v2389_v41 = vpop.eup %2388  ;;  %v970_v25 = vsub.f32 %v3318_v4, %v892_v29  ;;  %v971_v30 = vsub.f32 %v3320_v10, %v892_v29  ;;  %v1166_v22 = vadd.f32 %v2387_v35, %v2385_v59 }
 0x2ab   : > { %v2391_v40 = vpop.eup %2390  ;;  %v895_v48 = vpop.xlane.xlu1 %894  ;;  %v2016_v56 = vpack.c.bf16 %v2389_v41, %v2385_v59 }
 0x2ac   : > { %v1066_v39 = vmul.f32 1.442695, %v970_v25  ;;  %v1068_v26 = vmul.f32 1.442695, %v971_v30  ;;  %v972_v42 = vsub.f32 %v3322_v15, %v895_v48  ;;  %v973_v43 = vsub.f32 %v3324_v20, %v895_v48  ;;  %1167 = vadd.xlane.f32.xlu0 %v1166_v22  ;;  %v1318_v20 = vld [vmem:[%s3120_s26 + $0xe0] sm:$0xff]  ;;  %v1327_v22 = vld [vmem:[%s3120_s26 + $0x128] sm:$0xff] }
 0x2ad   : > { %v1169_v4 = vadd.f32 %v2391_v40, %v2389_v41  ;;  %v2013_v10 = vpack.c.bf16 %v2391_v40, %v2387_v35  ;;  %vm1382_vm12 = vcmp.ge.s32.totalorder %v1318_v20, 1288490189  ;;  %v1329_v40 = vld [vmem:[%s3120_s26 + $0x138] sm:$0xff]  ;;  %vm1391_vm6 = vcmp.ge.s32.totalorder %v1327_v22, 1288490189  ;;  %v3726_v20 = vld [vmem:[#allocation21_spill] sm:$0xff] }
 0x2ae   : > { %2400 = vpow2.f32 %v1066_v39  ;;  %v1070_v49 = vmul.f32 1.442695, %v972_v42  ;;  %v1072_v28 = vmul.f32 1.442695, %v973_v43  ;;  %vm2021_vm15 = vmpackc.low %vm1384_vm13, %vm1382_vm12  ;;  %v1328_v39 = vld [vmem:[%s3120_s26 + $0x130] sm:$0xff] }
 0x2af   : > { %2402 = vpow2.f32 %v1068_v26  ;;  %1170 = vadd.xlane.f32.xlu1 %v1169_v4  ;;  %2014 = vmatprep.mubr.msk.bf16.mxu1 %vm2012_vm8, %v2013_v10  ;;  %vm1393_vm7 = vcmp.ge.s32.totalorder %v1329_v40, 1288490189  ;;  %v3732_v22 = vld [vmem:[#allocation27_spill] sm:$0xff] }
 0x2b0   : > { %v2393_v15 = vpop.eup %2392  ;;  %2404 = vpow2.f32 %v1070_v49  ;;  %vm2030_vm10 = vmpackc.low %vm1393_vm7, %vm1391_vm6 }
 0x2b1   : > { %v2395_v14 = vpop.eup %2394  ;;  %2406 = vpow2.f32 %v1072_v28  ;;  %2017 = vmatmul.mubr.msk.bf16.gmra.mrb[24].mxu1 %vm2015_vm9, %v2016_v56  ;;  %v898_v9 = vpop.xlane.xlu0 %897  ;;  %vm1392_vm9 = vcmp.ge.s32.totalorder %v1328_v39, 1288490189 }
 0x2b2   : > { %v2397_v33 = vpop.eup %2396  ;;  %v974_v36 = vsub.f32 %v3330_v32, %v898_v9  ;;  %v975_v16 = vsub.f32 %v3332_v38, %v898_v9  ;;  %v1172_v62 = vadd.f32 %v2395_v14, %v2393_v15 }
 0x2b3   : > { %v2399_v27 = vpop.eup %2398  ;;  %v901_v1 = vpop.xlane.xlu1 %900  ;;  %v2022_v24 = vpack.c.bf16 %v2397_v33, %v2393_v15 }
 0x2b4   : > { %v1074_v50 = vmul.f32 1.442695, %v974_v36  ;;  %v1076_v53 = vmul.f32 1.442695, %v975_v16  ;;  %v976_v19 = vsub.f32 %v3334_v44, %v901_v1  ;;  %v977_v21 = vsub.f32 %v3336_v46, %v901_v1  ;;  %1173 = vadd.xlane.f32.xlu0 %v1172_v62  ;;  %v1322_v46 = vld [vmem:[%s3120_s26 + $0x100] sm:$0xff]  ;;  %v1333_v36 = vld [vmem:[%s3120_s26 + $0x158] sm:$0xff] }
 0x2b5   : > { %v1175_v32 = vadd.f32 %v2399_v27, %v2397_v33  ;;  %v2019_v38 = vpack.c.bf16 %v2399_v27, %v2395_v14  ;;  %vm1386_vm2 = vcmp.ge.s32.totalorder %v1322_v46, 1288490189  ;;  %v1331_v33 = vld [vmem:[%s3120_s26 + $0x148] sm:$0xff]  ;;  %v1330_v62 = vld [vmem:[%s3120_s26 + $0x140] sm:$0xff]  ;;  %v1332_v27 = vld [vmem:[%s3120_s26 + $0x150] sm:$0xff] }
 0x2b6   : > { %2408 = vpow2.f32 %v1074_v50  ;;  %v1078_v5 = vmul.f32 1.442695, %v976_v19  ;;  %v1080_v23 = vmul.f32 1.442695, %v977_v21  ;;  %vm2027_vm5 = vmpackc.low %vm1388_vm3, %vm1386_vm2  ;;  %vm1395_vm12 = vcmp.ge.s32.totalorder %v1331_v33, 1288490189 }
 0x2b7   : > { %2410 = vpow2.f32 %v1076_v53  ;;  %1176 = vadd.xlane.f32.xlu1 %v1175_v32  ;;  %2020 = vmatprep.mubr.msk.bf16.mxu1 %vm2018_vm14, %v2019_v38  ;;  %vm1397_vm13 = vcmp.ge.s32.totalorder %v1333_v36, 1288490189  ;;  %v3727_v19 = vld [vmem:[#allocation22_spill] sm:$0xff]  ;;  %v3728_v32 = vld [vmem:[#allocation23_spill] sm:$0xff]  ;;  %vm1394_vm14 = vcmp.ge.s32.totalorder %v1330_v62, 1288490189 }
 0x2b8   : > { %v2401_v44 = vpop.eup %2400  ;;  %2412 = vpow2.f32 %v1078_v5  ;;  %vm2036_vm0 = vmpackc.low %vm1397_vm13, %vm1395_vm12 }
 0x2b9   : > { %v2403_v54 = vpop.eup %2402  ;;  %2414 = vpow2.f32 %v1080_v23  ;;  %2023 = vmatmul.mubr.msk.bf16.gmra.mrb[28].mxu1 %vm2021_vm15, %v2022_v24  ;;  %v904_v37 = vpop.xlane.xlu0 %903  ;;  %vm1396_vm15 = vcmp.ge.s32.totalorder %v1332_v27, 1288490189 }
 0x2ba   : > { %v2405_v55 = vpop.eup %2404  ;;  %v978_v2 = vsub.f32 %v3342_v0, %v904_v37  ;;  %v979_v57 = vsub.f32 %v3344_v3, %v904_v37  ;;  %v1178_v13 = vadd.f32 %v2403_v54, %v2401_v44  ;;  %vm2039_vm1 = vmpackc.low %vm1396_vm15, %vm1394_vm14 }
 0x2bb   : > { %v2407_v59 = vpop.eup %2406  ;;  %v907_v61 = vpop.xlane.xlu1 %906  ;;  %v2028_v48 = vpack.c.bf16 %v2405_v55, %v2401_v44  ;;  %v3729_v44 = vld [vmem:[#allocation24_spill] sm:$0xff] }
 0x2bc   : > { %v1082_v17 = vmul.f32 1.442695, %v978_v2  ;;  %v1084_v35 = vmul.f32 1.442695, %v979_v57  ;;  %v980_v29 = vsub.f32 %v3346_v7, %v907_v61  ;;  %v981_v41 = vsub.f32 %v3348_v18, %v907_v61  ;;  %1179 = vadd.xlane.f32.xlu0 %v1178_v13  ;;  %v1326_v18 = vld [vmem:[%s3120_s26 + $0x120] sm:$0xff]  ;;  %v1335_v13 = vld [vmem:[%s3120_s26 + $0x168] sm:$0xff] }
 0x2bd   : > { %v1181_v0 = vadd.f32 %v2407_v59, %v2405_v55  ;;  %v2025_v3 = vpack.c.bf16 %v2407_v59, %v2403_v54  ;;  %vm1390_vm8 = vcmp.ge.s32.totalorder %v1326_v18, 1288490189  ;;  %v1337_v59 = vld [vmem:[%s3120_s26 + $0x178] sm:$0xff]  ;;  %vm1399_vm2 = vcmp.ge.s32.totalorder %v1335_v13, 1288490189 }
 0x2be   : > { %2416 = vpow2.f32 %v1082_v17  ;;  %v1086_v25 = vmul.f32 1.442695, %v980_v29  ;;  %v1088_v30 = vmul.f32 1.442695, %v981_v41  ;;  %vm2033_vm11 = vmpackc.low %vm1392_vm9, %vm1390_vm8  ;;  %v1336_v29 = vld [vmem:[%s3120_s26 + $0x170] sm:$0xff] }
 0x2bf   : > { %2418 = vpow2.f32 %v1084_v35  ;;  %1182 = vadd.xlane.f32.xlu1 %v1181_v0  ;;  %2026 = vmatprep.mubr.msk.bf16.mxu1 %vm2024_vm4, %v2025_v3  ;;  %v1334_v35 = vld [vmem:[%s3120_s26 + $0x160] sm:$0xff]  ;;  %vm1401_vm3 = vcmp.ge.s32.totalorder %v1337_v59, 1288490189 }
 0x2c0   : > { %v2409_v7 = vpop.eup %2408  ;;  %2420 = vpow2.f32 %v1086_v25  ;;  %v3731_v25 = vld [vmem:[#allocation26_spill] sm:$0xff]  ;;  %vm1398_vm4 = vcmp.ge.s32.totalorder %v1334_v35, 1288490189  ;;  %vm2042_vm6 = vmpackc.low %vm1401_vm3, %vm1399_vm2  ;;  %v3737_v35 = vld [vmem:[#allocation32_spill] sm:$0xff] }
 0x2c1   : > { %v2411_v26 = vpop.eup %2410  ;;  %2422 = vpow2.f32 %v1088_v30  ;;  %2029 = vmatmul.mubr.msk.bf16.gmra.mrb[32].mxu1 %vm2027_vm5, %v2028_v48  ;;  %v910_v42 = vpop.xlane.xlu0 %909  ;;  %vm1400_vm5 = vcmp.ge.s32.totalorder %v1336_v29, 1288490189 }
 0x2c2   : > { %v2413_v43 = vpop.eup %2412  ;;  %v982_v4 = vsub.f32 %v3354_v34, %v910_v42  ;;  %v983_v10 = vsub.f32 %v3356_v45, %v910_v42  ;;  %v1184_v49 = vadd.f32 %v2411_v26, %v2409_v7  ;;  %v3733_v42 = vld [vmem:[#allocation28_spill] sm:$0xff]  ;;  %vm2045_vm7 = vmpackc.low %vm1400_vm5, %vm1398_vm4 }
 0x2c3   : > { %v2415_v28 = vpop.eup %2414  ;;  %v913_v31 = vpop.xlane.xlu1 %912  ;;  %v2034_v16 = vpack.c.bf16 %v2413_v43, %v2409_v7 }
 0x2c4   : > { %v1090_v52 = vmul.f32 1.442695, %v982_v4  ;;  %v1092_v56 = vmul.f32 1.442695, %v983_v10  ;;  %v984_v15 = vsub.f32 %v3358_v51, %v913_v31  ;;  %v985_v8 = vsub.f32 %v3726_v20, %v913_v31  ;;  %1185 = vadd.xlane.f32.xlu0 %v1184_v49  ;;  %v3734_v4 = vld [vmem:[#allocation29_spill] sm:$0xff] }
 0x2c5   : > { %v1187_v34 = vadd.f32 %v2415_v28, %v2413_v43  ;;  %v2031_v45 = vpack.c.bf16 %v2415_v28, %v2411_v26 }
 0x2c6   : > { %2424 = vpow2.f32 %v1090_v52  ;;  %v1094_v14 = vmul.f32 1.442695, %v984_v15  ;;  %v1096_v9 = vmul.f32 1.442695, %v985_v8  ;;  %v1341_v15 = vld [vmem:[%s3120_s26 + $0x198] sm:$0xff] }
 0x2c7   : > { %2426 = vpow2.f32 %v1092_v56  ;;  %1188 = vadd.xlane.f32.xlu1 %v1187_v34  ;;  %2032 = vmatprep.mubr.msk.bf16.mxu1 %vm2030_vm10, %v2031_v45  ;;  %v1339_v56 = vld [vmem:[%s3120_s26 + $0x188] sm:$0xff]  ;;  %v1338_v34 = vld [vmem:[%s3120_s26 + $0x180] sm:$0xff]  ;;  %v1340_v45 = vld [vmem:[%s3120_s26 + $0x190] sm:$0xff]  ;;  %vm1405_vm9 = vcmp.ge.s32.totalorder %v1341_v15, 1288490189 }
 0x2c8   : > { %v2417_v51 = vpop.eup %2416  ;;  %2428 = vpow2.f32 %v1094_v14  ;;  %vm1403_vm8 = vcmp.ge.s32.totalorder %v1339_v56, 1288490189  ;;  %vm1402_vm10 = vcmp.ge.s32.totalorder %v1338_v34, 1288490189  ;;  %v1350_v56 = vld [vmem:[%s3120_s26 + $0x1e0] sm:$0xff]  ;;  %v1352_v15 = vld [vmem:[%s3120_s26 + $0x1f0] sm:$0xff] }
 0x2c9   : > { %v2419_v1 = vpop.eup %2418  ;;  %2430 = vpow2.f32 %v1096_v9  ;;  %2035 = vmatmul.mubr.msk.bf16.gmra.mrb[36].mxu1 %vm2033_vm11, %v2034_v16  ;;  %v916_v50 = vpop.xlane.xlu0 %915  ;;  %v3735_v16 = vld [vmem:[#allocation30_spill] sm:$0xff]  ;;  %vm1404_vm11 = vcmp.ge.s32.totalorder %v1340_v45, 1288490189  ;;  %vm2048_vm12 = vmpackc.low %vm1405_vm9, %vm1403_vm8 }
 0x2ca   : > { %v2421_v53 = vpop.eup %2420  ;;  %v986_v21 = vsub.f32 %v3727_v19, %v916_v50  ;;  %v987_v38 = vsub.f32 %v3728_v32, %v916_v50  ;;  %v1190_v5 = vadd.f32 %v2419_v1, %v2417_v51  ;;  %vm2051_vm13 = vmpackc.low %vm1404_vm11, %vm1402_vm10 }
 0x2cb   : > { %v2423_v23 = vpop.eup %2422  ;;  %v919_v6 = vpop.xlane.xlu1 %918  ;;  %v2040_v61 = vpack.c.bf16 %v2421_v53, %v2417_v51 }
 0x2cc   : > { %v1098_v11 = vmul.f32 1.442695, %v986_v21  ;;  %v1100_v24 = vmul.f32 1.442695, %v987_v38  ;;  %v988_v46 = vsub.f32 %v3729_v44, %v919_v6  ;;  %v989_v54 = vsub.f32 %v3730_v47, %v919_v6  ;;  %1191 = vadd.xlane.f32.xlu0 %v1190_v5  ;;  %v3736_v21 = vld [vmem:[#allocation31_spill] sm:$0xff]  ;;  %v1343_v6 = vld [vmem:[%s3120_s26 + $0x1a8] sm:$0xff] }
 0x2cd   : > { %v1193_v37 = vadd.f32 %v2423_v23, %v2421_v53  ;;  %v2037_v55 = vpack.c.bf16 %v2423_v23, %v2419_v1  ;;  %v1342_v44 = vld [vmem:[%s3120_s26 + $0x1a0] sm:$0xff]  ;;  %vm1407_vm14 = vcmp.ge.s32.totalorder %v1343_v6, 1288490189 }
 0x2ce   : > { %2432 = vpow2.f32 %v1098_v11  ;;  %v1102_v2 = vmul.f32 1.442695, %v988_v46  ;;  %v1104_v57 = vmul.f32 1.442695, %v989_v54  ;;  %v1345_v11 = vld [vmem:[%s3120_s26 + $0x1b8] sm:$0xff]  ;;  %v1344_v46 = vld [vmem:[%s3120_s26 + $0x1b0] sm:$0xff] }
 0x2cf   : > { %2434 = vpow2.f32 %v1100_v24  ;;  %1194 = vadd.xlane.f32.xlu1 %v1193_v37  ;;  %2038 = vmatprep.mubr.msk.bf16.mxu1 %vm2036_vm0, %v2037_v55  ;;  %vm1409_vm15 = vcmp.ge.s32.totalorder %v1345_v11, 1288490189  ;;  %vm1406_vm0 = vcmp.ge.s32.totalorder %v1342_v44, 1288490189 }
 0x2d0   : > { %v2425_v17 = vpop.eup %2424  ;;  %2436 = vpow2.f32 %v1102_v2  ;;  %vm2054_vm2 = vmpackc.low %vm1409_vm15, %vm1407_vm14  ;;  %vm1416_vm14 = vcmp.ge.s32.totalorder %v1352_v15, 1288490189 }
 0x2d1   : > { %v2427_v41 = vpop.eup %2426  ;;  %2438 = vpow2.f32 %v1104_v57  ;;  %2041 = vmatmul.mubr.msk.bf16.gmra.mrb[40].mxu1 %vm2039_vm1, %v2040_v61  ;;  %v922_v0 = vpop.xlane.xlu0 %921  ;;  %vm1408_vm1 = vcmp.ge.s32.totalorder %v1344_v46, 1288490189 }
 0x2d2   : > { %v2429_v3 = vpop.eup %2428  ;;  %v990_v30 = vsub.f32 %v3731_v25, %v922_v0  ;;  %v991_v40 = vsub.f32 %v3732_v22, %v922_v0  ;;  %v1196_v48 = vadd.f32 %v2427_v41, %v2425_v17  ;;  %v1347_v25 = vld [vmem:[%s3120_s26 + $0x1c8] sm:$0xff]  ;;  %vm2057_vm3 = vmpackc.low %vm1408_vm1, %vm1406_vm0 }
 0x2d3   : > { %v2431_v7 = vpop.eup %2430  ;;  %v925_v18 = vpop.xlane.xlu1 %924  ;;  %v2046_v20 = vpack.c.bf16 %v2429_v3, %v2425_v17  ;;  %vm1411_vm4 = vcmp.ge.s32.totalorder %v1347_v25, 1288490189 }
 0x2d4   : > { %v1106_v39 = vmul.f32 1.442695, %v990_v30  ;;  %v1108_v26 = vmul.f32 1.442695, %v991_v40  ;;  %v992_v43 = vsub.f32 %v3733_v42, %v925_v18  ;;  %v993_v10 = vsub.f32 %v3734_v4, %v925_v18  ;;  %1197 = vadd.xlane.f32.xlu0 %v1196_v48  ;;  %v1348_v18 = vld [vmem:[%s3120_s26 + $0x1d0] sm:$0xff] }
 0x2d5   : > { %v1199_v49 = vadd.f32 %v2431_v7, %v2429_v3  ;;  %v2043_v28 = vpack.c.bf16 %v2431_v7, %v2427_v41  ;;  %v3738_v41 = vld [vmem:[#allocation33_spill] sm:$0xff]  ;;  %vm1412_vm8 = vcmp.ge.s32.totalorder %v1348_v18, 1288490189 }
 0x2d6   : > { %2440 = vpow2.f32 %v1106_v39  ;;  %v1110_v31 = vmul.f32 1.442695, %v992_v43  ;;  %v1112_v52 = vmul.f32 1.442695, %v993_v10  ;;  %v1346_v7 = vld [vmem:[%s3120_s26 + $0x1c0] sm:$0xff] }
 0x2d7   : > { %2442 = vpow2.f32 %v1108_v26  ;;  %1200 = vadd.xlane.f32.xlu1 %v1199_v49  ;;  %2044 = vmatprep.mubr.msk.bf16.mxu1 %vm2042_vm6, %v2043_v28  ;;  %v1351_v49 = vld [vmem:[%s3120_s26 + $0x1e8] sm:$0xff]  ;;  %v1353_v28 = vld [vmem:[%s3120_s26 + $0x1f8] sm:$0xff] }
 0x2d8   : > { %v2433_v8 = vpop.eup %2432  ;;  %2444 = vpow2.f32 %v1110_v31  ;;  %vm1415_vm10 = vcmp.ge.s32.totalorder %v1351_v49, 1288490189  ;;  %vm1417_vm11 = vcmp.ge.s32.totalorder %v1353_v28, 1288490189 }
 0x2d9   : > { %v2435_v14 = vpop.eup %2434  ;;  %2446 = vpow2.f32 %v1112_v52  ;;  %2047 = vmatmul.mubr.msk.bf16.gmra.mrb[44].mxu1 %vm2045_vm7, %v2046_v20  ;;  %v928_v9 = vpop.xlane.xlu0 %927  ;;  %vm1410_vm7 = vcmp.ge.s32.totalorder %v1346_v7, 1288490189 }
 0x2da   : > { %v2437_v33 = vpop.eup %2436  ;;  %v994_v36 = vsub.f32 %v3390_v63, %v928_v9  ;;  %v995_v51 = vsub.f32 %v3735_v16, %v928_v9  ;;  %v1202_v62 = vadd.f32 %v2435_v14, %v2433_v8  ;;  %vm2063_vm9 = vmpackc.low %vm1412_vm8, %vm1410_vm7 }
 0x2db   : > { %v2439_v27 = vpop.eup %2438  ;;  %v931_v1 = vpop.xlane.xlu1 %930  ;;  %v2052_v24 = vpack.c.bf16 %v2437_v33, %v2433_v8 }
 0x2dc   : > { %v1114_v50 = vmul.f32 1.442695, %v994_v36  ;;  %v1116_v53 = vmul.f32 1.442695, %v995_v51  ;;  %v996_v19 = vsub.f32 %v3394_v12, %v931_v1  ;;  %v997_v32 = vsub.f32 %v3736_v21, %v931_v1  ;;  %1203 = vadd.xlane.f32.xlu0 %v1202_v62 }
 0x2dd   : > { %v1205_v63 = vadd.f32 %v2439_v27, %v2437_v33  ;;  %v2049_v38 = vpack.c.bf16 %v2439_v27, %v2435_v14 }
 0x2de   : > { %2448 = vpow2.f32 %v1114_v50  ;;  %v1118_v5 = vmul.f32 1.442695, %v996_v19  ;;  %v1120_v23 = vmul.f32 1.442695, %v997_v32 }
 0x2df   : > { %2450 = vpow2.f32 %v1116_v53  ;;  %1206 = vadd.xlane.f32.xlu1 %v1205_v63  ;;  %2050 = vmatprep.mubr.msk.bf16.mxu1 %vm2048_vm12, %v2049_v38  ;;  %vm2066_vm12 = vmpackc.low %vm1417_vm11, %vm1415_vm10 }
 0x2e0   : > { %v2441_v12 = vpop.eup %2440  ;;  %2452 = vpow2.f32 %v1118_v5 }
 0x2e1   : > { %v2443_v47 = vpop.eup %2442  ;;  %2454 = vpow2.f32 %v1120_v23  ;;  %2053 = vmatmul.mubr.msk.bf16.gmra.mrb[48].mxu1 %vm2051_vm13, %v2052_v24  ;;  %v934_v54 = vpop.xlane.xlu0 %933  ;;  %vm1414_vm13 = vcmp.ge.s32.totalorder %v1350_v56, 1288490189 }
 0x2e2   : > { %v2445_v37 = vpop.eup %2444  ;;  %v998_v55 = vsub.f32 %v3402_v58, %v934_v54  ;;  %v999_v2 = vsub.f32 %v3404_v60, %v934_v54  ;;  %v1208_v57 = vadd.f32 %v2443_v47, %v2441_v12  ;;  %v1349_v60 = vld [vmem:[%s3120_s26 + $0x1d8] sm:$0xff]  ;;  %vm2069_vm15 = vmpackc.low %vm1416_vm14, %vm1414_vm13 }
 0x2e3   : > { %v2447_v13 = vpop.eup %2446  ;;  %v937_v59 = vpop.xlane.xlu1 %936  ;;  %v2058_v40 = vpack.c.bf16 %v2445_v37, %v2441_v12  ;;  %vm1413_vm5 = vcmp.ge.s32.totalorder %v1349_v60, 1288490189 }
 0x2e4   : > { %v1122_v61 = vmul.f32 1.442695, %v998_v55  ;;  %v1124_v17 = vmul.f32 1.442695, %v999_v2  ;;  %v1000_v29 = vsub.f32 %v3737_v35, %v937_v59  ;;  %v1001_v0 = vsub.f32 %v3738_v41, %v937_v59  ;;  %1209 = vadd.xlane.f32.xlu0 %v1208_v57  ;;  %vm2060_vm6 = vmpackc.low %vm1413_vm5, %vm1411_vm4 }
 0x2e5   : > { %v1211_v3 = vadd.f32 %v2447_v13, %v2445_v37  ;;  %v2055_v58 = vpack.c.bf16 %v2447_v13, %v2443_v47 }
 0x2e6   : > { %2456 = vpow2.f32 %v1122_v61  ;;  %v1126_v30 = vmul.f32 1.442695, %v1000_v29  ;;  %v1128_v22 = vmul.f32 1.442695, %v1001_v0 }
 0x2e7   : > { %2458 = vpow2.f32 %v1124_v17  ;;  %1212 = vadd.xlane.f32.xlu1 %v1211_v3  ;;  %2056 = vmatprep.mubr.msk.bf16.mxu1 %vm2054_vm2, %v2055_v58 }
 0x2e8   : > { %v2449_v48 = vpop.eup %2448  ;;  %2460 = vpow2.f32 %v1126_v30 }
 0x2e9   : > { %v2451_v39 = vpop.eup %2450  ;;  %2462 = vpow2.f32 %v1128_v22  ;;  %2059 = vmatmul.mubr.msk.bf16.gmra.mrb[52].mxu1 %vm2057_vm3, %v2058_v40 }
 0x2ea   : > { %v2453_v26 = vpop.eup %2452  ;;  %v1214_v42 = vadd.f32 %v2451_v39, %v2449_v48 }
 0x2eb   : > { %v2455_v43 = vpop.eup %2454  ;;  %v2064_v31 = vpack.c.bf16 %v2453_v26, %v2449_v48 }
 0x2ec   : > { %1215 = vadd.xlane.f32.xlu0 %v1214_v42  ;;  %v1217_v4 = vadd.f32 %v2455_v43, %v2453_v26  ;;  %v2061_v10 = vpack.c.bf16 %v2455_v43, %v2451_v39 }
 0x2ee   : > { %1218 = vadd.xlane.f32.xlu1 %v1217_v4  ;;  %2062 = vmatprep.mubr.msk.bf16.mxu1 %vm2060_vm6, %v2061_v10 }
 0x2f0   : > { %v2457_v52 = vpop.eup %2456 }
 0x2f1   : > { %v2459_v20 = vpop.eup %2458  ;;  %2065 = vmatmul.mubr.msk.bf16.gmra.mrb[56].mxu1 %vm2063_vm9, %v2064_v31 }
 0x2f2   : > { %v2461_v8 = vpop.eup %2460  ;;  %v1220_v34 = vadd.f32 %v2459_v20, %v2457_v52 }
 0x2f3   : > { %v2463_v45 = vpop.eup %2462  ;;  %v2070_v33 = vpack.c.bf16 %v2461_v8, %v2457_v52 }
 0x2f4   : > { %1221 = vadd.xlane.f32.xlu0 %v1220_v34  ;;  %v1223_v14 = vadd.f32 %v2463_v45, %v2461_v8  ;;  %v2067_v9 = vpack.c.bf16 %v2463_v45, %v2459_v20 }
 0x2f6   : > { %1224 = vadd.xlane.f32.xlu1 %v1223_v14  ;;  %2068 = vmatprep.mubr.msk.bf16.mxu1 %vm2066_vm12, %v2067_v9 }
 0x2f9   : > { %2071 = vmatmul.mubr.msk.bf16.gmra.mrb[60].mxu1 %vm2069_vm15, %v2070_v33 }
 0x309   : > { %v1132_v36 = vpop.xlane.xlu0 %1131 }
 0x30a   : > { %2464 = vrcp.f32 %v1132_v36 }
 0x30e   : > { %v1135_v16 = vpop.xlane.xlu1 %1134 }
 0x30f   : > { %2466 = vrcp.f32 %v1135_v16 }
 0x311   : > { %v1138_v51 = vpop.xlane.xlu0 %1137 }
 0x312   : > { %2468 = vrcp.f32 %v1138_v51 }
 0x314   : > { %v2465_v27 = vpop.eup %2464 }
 0x315   : > { %v1675_v19 = vmul.f32 5.0, %v2465_v27 }
 0x316   : > { %v1141_v62 = vpop.xlane.xlu1 %1140 }
 0x317   : > { %2470 = vrcp.f32 %v1141_v62 }
 0x319   : > { %v2467_v50 = vpop.eup %2466  ;;  %v1144_v21 = vpop.xlane.xlu0 %1143 }
 0x31a   : > { %v1676_v5 = vmul.f32 5.0, %v2467_v50  ;;  %2472 = vrcp.f32 %v1144_v21 }
 0x31c   : > { %v1147_v23 = vpop.xlane.xlu1 %1146  ;;  %v2469_v12 = vpop.eup %2468 }
 0x31d   : > { %2474 = vrcp.f32 %v1147_v23  ;;  %v1677_v54 = vmul.f32 5.0, %v2469_v12 }
 0x321   : > { %v2471_v46 = vpop.eup %2470  ;;  %v1150_v37 = vpop.xlane.xlu0 %1149 }
 0x322   : > { %v1678_v13 = vmul.f32 5.0, %v2471_v46  ;;  %2476 = vrcp.f32 %v1150_v37 }
 0x324   : > { %v1153_v59 = vpop.xlane.xlu1 %1152  ;;  %v2473_v29 = vpop.eup %2472 }
 0x325   : > { %2478 = vrcp.f32 %v1153_v59  ;;  %v1679_v58 = vmul.f32 5.0, %v2473_v29 }
 0x327   : > { %v2475_v0 = vpop.eup %2474 }
 0x328   : > { %v1680_v40 = vmul.f32 5.0, %v2475_v0 }
 0x329   : > { %v1156_v25 = vpop.xlane.xlu0 %1155 }
 0x32a   : > { %2480 = vrcp.f32 %v1156_v25 }
 0x32c   : > { %v1159_v48 = vpop.xlane.xlu1 %1158  ;;  %v2477_v26 = vpop.eup %2476 }
 0x32d   : > { %2482 = vrcp.f32 %v1159_v48  ;;  %v1681_v10 = vmul.f32 5.0, %v2477_v26 }
 0x32f   : > { %v2479_v43 = vpop.eup %2478 }
 0x330   : > { %v1682_v56 = vmul.f32 5.0, %v2479_v43 }
 0x331   : > { %v1162_v49 = vpop.xlane.xlu0 %1161 }
 0x332   : > { %2484 = vrcp.f32 %v1162_v49 }
 0x334   : > { %v1165_v15 = vpop.xlane.xlu1 %1164  ;;  %v2481_v45 = vpop.eup %2480 }
 0x335   : > { %2486 = vrcp.f32 %v1165_v15  ;;  %v1683_v36 = vmul.f32 5.0, %v2481_v45 }
 0x337   : > { %v2483_v9 = vpop.eup %2482 }
 0x339   : > { %v1168_v16 = vpop.xlane.xlu0 %1167 }
 0x33a   : > { %2488 = vrcp.f32 %v1168_v16 }
 0x33c   : > { %v1171_v50 = vpop.xlane.xlu1 %1170 }
 0x33d   : > { %2490 = vrcp.f32 %v1171_v50 }
 0x344   : > { %v1177_v46 = vpop.xlane.xlu1 %1176 }
 0x34c   : > { %v1183_v0 = vpop.xlane.xlu1 %1182 }
 0x354   : > { %v2146_v1 = vpop.f32.mrb[0].mxu1  ;;  %v1189_v43 = vpop.xlane.xlu1 %1188 }
 0x355   : > { %v2147_v53 = vpop.f32.mrb[1].mxu1 }
 0x356   : > { %v2148_v32 = vadd.f32 %v2147_v53, %v2146_v1  ;;  %v2149_v63 = vpop.f32.mrb[2].mxu1  ;;  %v1684_v1 = vmul.f32 5.0, %v2483_v9 }
 0x357   : > { %v2150_v38 = vpop.f32.mrb[3].mxu1 }
 0x358   : > { %v1707_v6 = vmul.f32 %v2148_v32, %v1675_v19  ;;  %v2151_v11 = vadd.f32 %v2150_v38, %v2149_v63  ;;  %v2485_v32 = vpop.eup %2484 }
 0x359   : > { %v2487_v38 = vpop.eup %2486  ;;  %v1685_v23 = vmul.f32 5.0, %v2485_v32 }
 0x35a   : > { %1739 = vst [vmem:[%s3561_s12] sm:$0xff] %v1707_v6  ;;  %v1708_v24 = vmul.f32 %v2151_v11, %v1676_v5  ;;  %v1174_v6 = vpop.xlane.xlu0 %1173 }
 0x35b   : > { %2492 = vrcp.f32 %v1174_v6 }
 0x35c   : > { %1740 = vst [vmem:[%s3561_s12 + $0x8] sm:$0xff] %v1708_v24  ;;  %v2152_v44 = vpop.f32.mrb[4].mxu1  ;;  %2494 = vrcp.f32 %v1177_v46  ;;  %v1195_v9 = vpop.xlane.xlu1 %1194 }
 0x35d   : > { %v2153_v47 = vpop.f32.mrb[5].mxu1 }
 0x35e   : > { %v2154_v55 = vadd.f32 %v2153_v47, %v2152_v44  ;;  %v2155_v2 = vpop.f32.mrb[6].mxu1  ;;  %v1686_v44 = vmul.f32 5.0, %v2487_v38 }
 0x35f   : > { %v2156_v57 = vpop.f32.mrb[7].mxu1 }
 0x360   : > { %v1709_v61 = vmul.f32 %v2154_v55, %v1677_v54  ;;  %v2157_v17 = vadd.f32 %v2156_v57, %v2155_v2  ;;  %v2489_v55 = vpop.eup %2488 }
 0x361   : > { %v2491_v57 = vpop.eup %2490  ;;  %v1687_v59 = vmul.f32 5.0, %v2489_v55 }
 0x362   : > { %1741 = vst [vmem:[%s3561_s12 + $0x10] sm:$0xff] %v1709_v61  ;;  %v1710_v35 = vmul.f32 %v2157_v17, %v1678_v13  ;;  %v1180_v61 = vpop.xlane.xlu0 %1179 }
 0x363   : > { %2496 = vrcp.f32 %v1180_v61 }
 0x364   : > { %1742 = vst [vmem:[%s3561_s12 + $0x18] sm:$0xff] %v1710_v35  ;;  %v2158_v41 = vpop.f32.mrb[8].mxu1  ;;  %2498 = vrcp.f32 %v1183_v0  ;;  %v1201_v38 = vpop.xlane.xlu1 %1200 }
 0x365   : > { %v2159_v3 = vpop.f32.mrb[9].mxu1 }
 0x366   : > { %v2160_v60 = vadd.f32 %v2159_v3, %v2158_v41  ;;  %v2161_v30 = vpop.f32.mrb[10].mxu1  ;;  %v1688_v41 = vmul.f32 5.0, %v2491_v57 }
 0x367   : > { %v2162_v22 = vpop.f32.mrb[11].mxu1 }
 0x368   : > { %v1711_v7 = vmul.f32 %v2160_v60, %v1679_v58  ;;  %v2163_v18 = vadd.f32 %v2162_v22, %v2161_v30  ;;  %v2493_v60 = vpop.eup %2492 }
 0x369   : > { %v2495_v22 = vpop.eup %2494  ;;  %v1689_v48 = vmul.f32 5.0, %v2493_v60 }
 0x36a   : > { %1743 = vst [vmem:[%s3561_s12 + $0x20] sm:$0xff] %v1711_v7  ;;  %v1712_v39 = vmul.f32 %v2163_v18, %v1680_v40  ;;  %v1186_v7 = vpop.xlane.xlu0 %1185 }
 0x36b   : > { %2500 = vrcp.f32 %v1186_v7 }
 0x36c   : > { %1744 = vst [vmem:[%s3561_s12 + $0x28] sm:$0xff] %v1712_v39  ;;  %v2164_v42 = vpop.f32.mrb[12].mxu1  ;;  %2502 = vrcp.f32 %v1189_v43  ;;  %v1207_v57 = vpop.xlane.xlu1 %1206 }
 0x36d   : > { %v2165_v4 = vpop.f32.mrb[13].mxu1 }
 0x36e   : > { %v2166_v28 = vadd.f32 %v2165_v4, %v2164_v42  ;;  %v2167_v31 = vpop.f32.mrb[14].mxu1  ;;  %v1690_v42 = vmul.f32 5.0, %v2495_v22 }
 0x36f   : > { %v2168_v52 = vpop.f32.mrb[15].mxu1 }
 0x370   : > { %v1713_v20 = vmul.f32 %v2166_v28, %v1681_v10  ;;  %v2169_v8 = vadd.f32 %v2168_v52, %v2167_v31  ;;  %v2497_v28 = vpop.eup %2496 }
 0x371   : > { %v2499_v52 = vpop.eup %2498  ;;  %v1691_v15 = vmul.f32 5.0, %v2497_v28 }
 0x372   : > { %1745 = vst [vmem:[%s3561_s12 + $0x30] sm:$0xff] %v1713_v20  ;;  %v1714_v34 = vmul.f32 %v2169_v8, %v1682_v56  ;;  %v1192_v20 = vpop.xlane.xlu0 %1191 }
 0x373   : > { %2504 = vrcp.f32 %v1192_v20 }
 0x374   : > { %1746 = vst [vmem:[%s3561_s12 + $0x38] sm:$0xff] %v1714_v34  ;;  %v2170_v14 = vpop.f32.mrb[16].mxu1  ;;  %2506 = vrcp.f32 %v1195_v9  ;;  %v1213_v22 = vpop.xlane.xlu1 %1212 }
 0x375   : > { %v2171_v33 = vpop.f32.mrb[17].mxu1 }
 0x376   : > { %v2172_v51 = vadd.f32 %v2171_v33, %v2170_v14  ;;  %v2173_v62 = vpop.f32.mrb[18].mxu1  ;;  %v1692_v14 = vmul.f32 5.0, %v2499_v52 }
 0x377   : > { %v2174_v27 = vpop.f32.mrb[19].mxu1 }
 0x378   : > { %v1715_v53 = vmul.f32 %v2172_v51, %v1683_v36  ;;  %v2175_v19 = vadd.f32 %v2174_v27, %v2173_v62  ;;  %v2501_v51 = vpop.eup %2500 }
 0x379   : > { %v2503_v27 = vpop.eup %2502  ;;  %v1693_v50 = vmul.f32 5.0, %v2501_v51 }
 0x37a   : > { %1747 = vst [vmem:[%s3561_s12 + $0x40] sm:$0xff] %v1715_v53  ;;  %v1716_v21 = vmul.f32 %v2175_v19, %v1684_v1  ;;  %v1198_v53 = vpop.xlane.xlu0 %1197 }
 0x37b   : > { %2508 = vrcp.f32 %v1198_v53  ;;  %v1219_v52 = vpop.xlane.xlu1 %1218 }
 0x37c   : > { %1748 = vst [vmem:[%s3561_s12 + $0x48] sm:$0xff] %v1716_v21  ;;  %v2176_v63 = vpop.f32.mrb[20].mxu1  ;;  %2510 = vrcp.f32 %v1201_v38 }
 0x37d   : > { %v2177_v5 = vpop.f32.mrb[21].mxu1 }
 0x37e   : > { %v2178_v11 = vadd.f32 %v2177_v5, %v2176_v63  ;;  %v2179_v24 = vpop.f32.mrb[22].mxu1  ;;  %v1694_v63 = vmul.f32 5.0, %v2503_v27 }
 0x37f   : > { %v2180_v12 = vpop.f32.mrb[23].mxu1 }
 0x380   : > { %v1717_v47 = vmul.f32 %v2178_v11, %v1685_v23  ;;  %v2181_v54 = vadd.f32 %v2180_v12, %v2179_v24  ;;  %v2505_v11 = vpop.eup %2504 }
 0x381   : > { %v2507_v12 = vpop.eup %2506  ;;  %v1695_v46 = vmul.f32 5.0, %v2505_v11 }
 0x382   : > { %1749 = vst [vmem:[%s3561_s12 + $0x50] sm:$0xff] %v1717_v47  ;;  %v1718_v37 = vmul.f32 %v2181_v54, %v1686_v44  ;;  %v1204_v47 = vpop.xlane.xlu0 %1203 }
 0x383   : > { %2512 = vrcp.f32 %v1204_v47  ;;  %v1225_v27 = vpop.xlane.xlu1 %1224 }
 0x384   : > { %1750 = vst [vmem:[%s3561_s12 + $0x58] sm:$0xff] %v1718_v37  ;;  %v2182_v2 = vpop.f32.mrb[24].mxu1  ;;  %2514 = vrcp.f32 %v1207_v57 }
 0x385   : > { %v2183_v13 = vpop.f32.mrb[25].mxu1 }
 0x386   : > { %v2184_v17 = vadd.f32 %v2183_v13, %v2182_v2  ;;  %v2185_v35 = vpop.f32.mrb[26].mxu1  ;;  %v1696_v2 = vmul.f32 5.0, %v2507_v12 }
 0x387   : > { %v2186_v29 = vpop.f32.mrb[27].mxu1 }
 0x388   : > { %v1719_v3 = vmul.f32 %v2184_v17, %v1687_v59  ;;  %v2187_v58 = vadd.f32 %v2186_v29, %v2185_v35  ;;  %v2509_v17 = vpop.eup %2508 }
 0x389   : > { %v2511_v29 = vpop.eup %2510  ;;  %v1697_v0 = vmul.f32 5.0, %v2509_v17 }
 0x38a   : > { %1751 = vst [vmem:[%s3561_s12 + $0x60] sm:$0xff] %v1719_v3  ;;  %v1720_v25 = vmul.f32 %v2187_v58, %v1688_v41  ;;  %v1210_v3 = vpop.xlane.xlu0 %1209 }
 0x38b   : > { %2516 = vrcp.f32 %v1210_v3 }
 0x38c   : > { %1752 = vst [vmem:[%s3561_s12 + $0x68] sm:$0xff] %v1720_v25  ;;  %v2188_v30 = vpop.f32.mrb[28].mxu1  ;;  %2518 = vrcp.f32 %v1213_v22 }
 0x38d   : > { %v2189_v40 = vpop.f32.mrb[29].mxu1 }
 0x38e   : > { %v2190_v18 = vadd.f32 %v2189_v40, %v2188_v30  ;;  %v2191_v39 = vpop.f32.mrb[30].mxu1  ;;  %v1698_v30 = vmul.f32 5.0, %v2511_v29 }
 0x38f   : > { %v2192_v26 = vpop.f32.mrb[31].mxu1 }
 0x390   : > { %v1721_v4 = vmul.f32 %v2190_v18, %v1689_v48  ;;  %v2193_v10 = vadd.f32 %v2192_v26, %v2191_v39  ;;  %v2513_v18 = vpop.eup %2512 }
 0x391   : > { %v2515_v26 = vpop.eup %2514  ;;  %v1699_v43 = vmul.f32 5.0, %v2513_v18 }
 0x392   : > { %1753 = vst [vmem:[%s3561_s12 + $0x70] sm:$0xff] %v1721_v4  ;;  %v1722_v49 = vmul.f32 %v2193_v10, %v1690_v42  ;;  %v1216_v4 = vpop.xlane.xlu0 %1215 }
 0x393   : > { %2520 = vrcp.f32 %v1216_v4 }
 0x394   : > { %1754 = vst [vmem:[%s3561_s12 + $0x78] sm:$0xff] %v1722_v49  ;;  %v2194_v31 = vpop.f32.mrb[32].mxu1  ;;  %2522 = vrcp.f32 %v1219_v52 }
 0x395   : > { %v2195_v56 = vpop.f32.mrb[33].mxu1 }
 0x396   : > { %v2196_v8 = vadd.f32 %v2195_v56, %v2194_v31  ;;  %v2197_v34 = vpop.f32.mrb[34].mxu1  ;;  %v1700_v31 = vmul.f32 5.0, %v2515_v26 }
 0x397   : > { %v2198_v45 = vpop.f32.mrb[35].mxu1 }
 0x398   : > { %v1723_v33 = vmul.f32 %v2196_v8, %v1691_v15  ;;  %v2199_v36 = vadd.f32 %v2198_v45, %v2197_v34  ;;  %v2517_v8 = vpop.eup %2516 }
 0x399   : > { %v2519_v45 = vpop.eup %2518  ;;  %v1701_v9 = vmul.f32 5.0, %v2517_v8 }
 0x39a   : > { %1755 = vst [vmem:[%s3561_s12 + $0x80] sm:$0xff] %v1723_v33  ;;  %v1724_v16 = vmul.f32 %v2199_v36, %v1692_v14  ;;  %v1222_v33 = vpop.xlane.xlu0 %1221 }
 0x39b   : > { %2524 = vrcp.f32 %v1222_v33 }
 0x39c   : > { %1756 = vst [vmem:[%s3561_s12 + $0x88] sm:$0xff] %v1724_v16  ;;  %v2200_v62 = vpop.f32.mrb[36].mxu1  ;;  %2526 = vrcp.f32 %v1225_v27 }
 0x39d   : > { %v2201_v1 = vpop.f32.mrb[37].mxu1 }
 0x39e   : > { %v2202_v19 = vadd.f32 %v2201_v1, %v2200_v62  ;;  %v2203_v21 = vpop.f32.mrb[38].mxu1  ;;  %v1702_v62 = vmul.f32 5.0, %v2519_v45 }
 0x39f   : > { %v2204_v32 = vpop.f32.mrb[39].mxu1 }
 0x3a0   : > { %v1725_v5 = vmul.f32 %v2202_v19, %v1693_v50  ;;  %v2205_v23 = vadd.f32 %v2204_v32, %v2203_v21  ;;  %v2521_v19 = vpop.eup %2520 }
 0x3a1   : > { %v2523_v32 = vpop.eup %2522  ;;  %v1703_v38 = vmul.f32 5.0, %v2521_v19 }
 0x3a2   : > { %1757 = vst [vmem:[%s3561_s12 + $0x90] sm:$0xff] %v1725_v5  ;;  %v1726_v6 = vmul.f32 %v2205_v23, %v1694_v63  ;;  %v1704_v11 = vmul.f32 5.0, %v2523_v32 }
 0x3a4   : > { %1758 = vst [vmem:[%s3561_s12 + $0x98] sm:$0xff] %v1726_v6  ;;  %v2206_v24 = vpop.f32.mrb[40].mxu1 }
 0x3a5   : > { %v2207_v44 = vpop.f32.mrb[41].mxu1 }
 0x3a6   : > { %v2208_v54 = vadd.f32 %v2207_v44, %v2206_v24  ;;  %v2209_v37 = vpop.f32.mrb[42].mxu1 }
 0x3a7   : > { %v2210_v55 = vpop.f32.mrb[43].mxu1 }
 0x3a8   : > { %v1727_v13 = vmul.f32 %v2208_v54, %v1695_v46  ;;  %v2211_v59 = vadd.f32 %v2210_v55, %v2209_v37  ;;  %v2525_v46 = vpop.eup %2524 }
 0x3a9   : > { %v2527_v54 = vpop.eup %2526  ;;  %v1705_v55 = vmul.f32 5.0, %v2525_v46 }
 0x3aa   : > { %1759 = vst [vmem:[%s3561_s12 + $0xa0] sm:$0xff] %v1727_v13  ;;  %v1728_v61 = vmul.f32 %v2211_v59, %v1696_v2  ;;  %v1706_v59 = vmul.f32 5.0, %v2527_v54 }
 0x3ac   : > { %1760 = vst [vmem:[%s3561_s12 + $0xa8] sm:$0xff] %v1728_v61  ;;  %v2212_v35 = vpop.f32.mrb[44].mxu1 }
 0x3ad   : > { %v2213_v41 = vpop.f32.mrb[45].mxu1 }
 0x3ae   : > { %v2214_v58 = vadd.f32 %v2213_v41, %v2212_v35  ;;  %v2215_v25 = vpop.f32.mrb[46].mxu1 }
 0x3af   : > { %v2216_v60 = vpop.f32.mrb[47].mxu1 }
 0x3b0   : > { %v1729_v40 = vmul.f32 %v2214_v58, %v1697_v0  ;;  %v2217_v48 = vadd.f32 %v2216_v60, %v2215_v25 }
 0x3b2   : > { %1761 = vst [vmem:[%s3561_s12 + $0xb0] sm:$0xff] %v1729_v40  ;;  %v1730_v7 = vmul.f32 %v2217_v48, %v1698_v30 }
 0x3b4   : > { %1762 = vst [vmem:[%s3561_s12 + $0xb8] sm:$0xff] %v1730_v7  ;;  %v2218_v39 = vpop.f32.mrb[48].mxu1 }
 0x3b5   : > { %v2219_v42 = vpop.f32.mrb[49].mxu1 }
 0x3b6   : > { %v2220_v10 = vadd.f32 %v2219_v42, %v2218_v39  ;;  %v2221_v49 = vpop.f32.mrb[50].mxu1 }
 0x3b7   : > { %v2222_v28 = vpop.f32.mrb[51].mxu1 }
 0x3b8   : > { %v1731_v56 = vmul.f32 %v2220_v10, %v1699_v43  ;;  %v2223_v15 = vadd.f32 %v2222_v28, %v2221_v49 }
 0x3ba   : > { %1763 = vst [vmem:[%s3561_s12 + $0xc0] sm:$0xff] %v1731_v56  ;;  %v1732_v20 = vmul.f32 %v2223_v15, %v1700_v31 }
 0x3bc   : > { %1764 = vst [vmem:[%s3561_s12 + $0xc8] sm:$0xff] %v1732_v20  ;;  %v2224_v34 = vpop.f32.mrb[52].mxu1 }
 0x3bd   : > { %v2225_v14 = vpop.f32.mrb[53].mxu1 }
 0x3be   : > { %v2226_v36 = vadd.f32 %v2225_v14, %v2224_v34  ;;  %v2227_v16 = vpop.f32.mrb[54].mxu1 }
 0x3bf   : > { %v2228_v51 = vpop.f32.mrb[55].mxu1 }
 0x3c0   : > { %v1733_v1 = vmul.f32 %v2226_v36, %v1701_v9  ;;  %v2229_v50 = vadd.f32 %v2228_v51, %v2227_v16 }
 0x3c2   : > { %1765 = vst [vmem:[%s3561_s12 + $0xd0] sm:$0xff] %v1733_v1  ;;  %v1734_v53 = vmul.f32 %v2229_v50, %v1702_v62 }
 0x3c4   : > { %1766 = vst [vmem:[%s3561_s12 + $0xd8] sm:$0xff] %v1734_v53  ;;  %v2230_v21 = vpop.f32.mrb[56].mxu1 }
 0x3c5   : > { %v2231_v63 = vpop.f32.mrb[57].mxu1 }
 0x3c6   : > { %v2232_v5 = vadd.f32 %v2231_v63, %v2230_v21  ;;  %v2233_v23 = vpop.f32.mrb[58].mxu1 }
 0x3c7   : > { %v2234_v6 = vpop.f32.mrb[59].mxu1 }
 0x3c8   : > { %v1735_v24 = vmul.f32 %v2232_v5, %v1703_v38  ;;  %v2235_v12 = vadd.f32 %v2234_v6, %v2233_v23 }
 0x3ca   : > { %1767 = vst [vmem:[%s3561_s12 + $0xe0] sm:$0xff] %v1735_v24  ;;  %v1736_v44 = vmul.f32 %v2235_v12, %v1704_v11 }
 0x3cc   : > { %1768 = vst [vmem:[%s3561_s12 + $0xe8] sm:$0xff] %v1736_v44  ;;  %v2236_v47 = vpop.f32.mrb[60].mxu1 }
 0x3cd   : > { %v2237_v37 = vpop.f32.mrb[61].mxu1 }
 0x3ce   : > { %v2238_v2 = vadd.f32 %v2237_v37, %v2236_v47  ;;  %v2239_v57 = vpop.f32.mrb[62].mxu1 }
 0x3cf   : > { %v2240_v13 = vpop.f32.mrb[63].mxu1 }
 0x3d0   : > { %v1737_v61 = vmul.f32 %v2238_v2, %v1705_v55  ;;  %v2241_v17 = vadd.f32 %v2240_v13, %v2239_v57 }
 0x3d2   : > { %1769 = vst [vmem:[%s3561_s12 + $0xf0] sm:$0xff] %v1737_v61  ;;  %v1738_v35 = vmul.f32 %v2241_v17, %v1706_v59 }
 0x3d4   : > { %1770 = vst [vmem:[%s3561_s12 + $0xf8] sm:$0xff] %v1738_v35 }
 0x3d5   : > { %2689 = shalt.err (!%p2686_p3)
}
 0x3d6   : > { %s2690_s28 = scalar_lea.hbm %s3598_s30, 4096  ;;  %s2694_s6 = scalar_lea.hbm %s3655_s5, 12288 }
 0x3d7   : > { %p2691_p7 = scmp.ne.s32.totalorder %s3598_s30, %s2690_s28  ;;  %p2695_p1 = scmp.lt.u32.totalorder %s3598_s30, %s3655_s5 }
 0x3d8   : > { %p2696_p0 = scmp.lt.u32.totalorder %s2694_s6, %s2690_s28  ;;  %p2698_p9 = scmp.lt.u32.totalorder %s2690_s28, %s3598_s30 }
 0x3d9   : > { %p2692_p12 = pnand %p2691_p7, %p3739_p2 }
 0x3da   : > { %p2697_p13 = por %p2696_p0, %p2695_p1 }
 0x3db   : > { %p2693_p8 = pneg %p2692_p12 }
 0x3dc   : > { %p2699_p4 = por %p2698_p9, %p2697_p13 }
 0x3de   : > { %p2700_p5 = pnand %p2699_p4, %p2693_p8 }
 0x3e0   : > { %2703 = shalt.err (!%p2700_p5)
}
 0x3e1   : > { %s2782_s13 = smov 128   ;;  %s2783_s27 = smov 8  }
 0x3e2   : > { %2254 = dma.vmem_to_hbm [thread:$0]  (%p3739_p2), %s3600_s0, 4096, %s3598_s30, %s1772_s1, %s2782_s13, %s2782_s13, %s2783_s27  }
 0x3e3 PF: > { %s3740_s25 = sld [smem:[#allocation17_spill]]  ;;  %s3741_s2 = sld [smem:[#allocation20_spill]] }
 0x3e4   : > { %p2280_p11 = scmp.ge.s32.totalorder %s2770_s23, 2 }
 0x3e9   : > { %s1802_s26 = sand.u32 1, %s3740_s25   ;;  %p3742_p10 = scmp.ne.s32.totalorder %s3741_s2, 0 }
 0x3ea   : > { %s1803_s12 = scalar_lea.sflag [#allocation4], %s1802_s26 }
 0x3eb   : > { %p2274_p6 = pnand %p2280_p11, %p3742_p10 }
 0x3ed   : > { %2745 = dma.done.wait (!%p2274_p6), %s1803_s12, 4096  }
 0x3ee   : > { %2747 = vsyncadd (!%p2274_p6), %s1803_s12, 4294963200  ;;  %s25_s23 = sadd.s32 1, %s2770_s23   ;;  %s3743_s7 = sld [smem:[#allocation19_spill]] }
 0x3ef   : > { %p22_p3 = scmp.ge.s32.totalorder %s25_s23, 5   ;;  %s3744_s8 = sld [smem:[#allocation18_spill]] }
 0x3f0   : > { %s3745_s18 = smov %s2754_s19  ;;  %s3746_s19 = smov %s2758_s20 }
 0x3f1   : > { %s3748_s21 = smov %s2766_s22  ;;  %24 = sbr.rel (!%p22_p3) target bundleno = 13 (0xd), region = 125 }
 0x3f4   : > { %s3747_s20 = smov %s3743_s7 }
 0x3f5   : > { %s3749_s22 = smov %s3744_s8 }
 0x3f8   :  { %1808 = vsyncpa [#allocation3], 1 }
 0x3f9   :  { %1810 = vsyncpa [#allocation3 + $0x1], 1 }
 0x3fa   :  { %1811 = vsyncpa [#allocation6], 1 }
 0x3fb   :  { %1813 = vsyncpa [#allocation6 + $0x1], 1 }
 0x3fc   :  { %1814 = vsyncpa [#allocation9], 1 }
 0x3fd   :  { %1815 = vsyncpa [#allocation4], 1 }
 0x3fe   :  { %1817 = vsyncpa [#allocation4 + $0x1], 1 }

</bundles_post_ra>
